<compile_context>
chip_gen: v7x
topology: tpu7x:2x2x1
jax: 0.10.0
libtpu: 0.0.40
codegen_flags: <defaults>
</compile_context>

<pallas_src>
import functools

import jax
import jax.numpy as jnp
from jax import lax
from jax.experimental import pallas as pl
from jax.experimental.pallas import tpu as pltpu


def _cdiv(a, b):
    return -(-a // b)


def _round_up(x, m):
    return _cdiv(x, m) * m


def _ce_kernel(pred_ref, lab_ref, out_ref, *, n_total, tile_r, lanes, n_inner,
               confidence, smooth_val):
    c = pl.program_id(0)          # 'parallel' split (megacore on multi-TC chips)
    i = pl.program_id(1)          # 'arbitrary' reduction over sample tiles

    @pl.when(i == 0)
    def _init():
        out_ref[...] = jnp.zeros_like(out_ref)

    # ---- dense (TILE_R, W) class planes: samples on sublanes AND lanes ----
    x0 = pred_ref[0].astype(jnp.float32)
    x1 = pred_ref[1].astype(jnp.float32)
    x2 = pred_ref[2].astype(jnp.float32)

    m = jnp.maximum(jnp.maximum(x0, x1), x2)                 # VPU max (no XLU)
    z0, z1, z2 = x0 - m, x1 - m, x2 - m
    lse = jnp.log(jnp.exp(z0) + jnp.exp(z1) + jnp.exp(z2))   # EUP exp/log
    lp0, lp1, lp2 = z0 - lse, z1 - lse, z2 - lse             # log-softmax rows

    lab = lab_ref[...].astype(jnp.int32)                     # int8 -> i32 unpack
    lp_lab = jnp.where(lab == 0, lp0, jnp.where(lab == 1, lp1, lp2))

    # sum_c(true_dist * logp) = smooth*sum_c(logp) + (conf - smooth)*logp[label]
    per_sample = (jnp.float32(smooth_val) * (lp0 + lp1 + lp2)
                  + jnp.float32(confidence - smooth_val) * lp_lab)

    tile_samples = tile_r * lanes
    tile_start = (c * n_inner + i) * tile_samples

    # Interior tiles: pure load + EUP + add, no masking work.
    @pl.when(tile_start + tile_samples <= n_total)
    def _acc_full():
        out_ref[...] += jnp.sum(per_sample, axis=0, keepdims=True)[None]

    # Only tiles that actually contain padding pay for the iota + select.
    @pl.when(tile_start + tile_samples > n_total)
    def _acc_tail():
        ridx = lax.broadcasted_iota(jnp.int32, (tile_r, lanes), 0)
        lidx = lax.broadcasted_iota(jnp.int32, (tile_r, lanes), 1)
        gidx = tile_start + ridx * lanes + lidx
        masked = jnp.where(gidx < n_total, per_sample, 0.0)
        out_ref[...] += jnp.sum(masked, axis=0, keepdims=True)[None]


def cross_entropy_loss(predicts, labels, weight_norm, *, beta, eps,
                       tile_r=512, lanes=512, num_splits=2):
    """Label-smoothed CE (3 classes) + beta * mean(weight_norm**2).

    predicts: (N, 3) float (PyTorch layout) or (3, N) float (lane-dense layout
              from a fused producer).  bf16 is fine; math is done in f32.
    labels:   (N,) integer class ids in {0, 1, 2}.
    weight_norm: any float array (regularizer term, computed in the wrapper).
    """
    assert predicts.ndim == 2
    if predicts.shape[0] == 3 and predicts.shape[1] != 3:
        pred_t = predicts                       # already lane-dense (3, N)
        n = predicts.shape[1]
    else:
        assert predicts.shape[1] == 3, "module is defined for 3 classes"
        n = predicts.shape[0]
        pred_t = predicts.T                     # TODO(synk): fuse upstream
    assert labels.shape == (n,)

    n_classes = 3
    confidence = 1.0 - eps
    smooth_val = eps / (n_classes - 1)

    assert lanes % 128 == 0, "lanes must be a multiple of the 128-lane width"
    assert num_splits >= 1

    # Shrink the tile for small problems; multiple of 32 keeps int8 labels and
    # bf16/f32 logits on native sublane tiling.
    rows_per_split = _cdiv(_cdiv(n, lanes), num_splits)
    tile_r_eff = _round_up(min(tile_r, max(rows_per_split, 1)), 32)
    tile_samples = tile_r_eff * lanes
    n_inner = max(1, _cdiv(n, tile_samples * num_splits))
    n_pad = num_splits * n_inner * tile_samples
    rows_pad = n_pad // lanes

    # Pad to whole tiles (real zeros -> no uninitialized-HBM reads), then fold
    # the sample axis onto (rows, lanes).  Both reshapes are free row-major views.
    pred_blocks = jnp.pad(pred_t, ((0, 0), (0, n_pad - n))).reshape(3, rows_pad, lanes)
    lab_blocks = jnp.pad(labels.astype(jnp.int8), (0, n_pad - n)).reshape(rows_pad, lanes)

    kernel = functools.partial(
        _ce_kernel,
        n_total=n,
        tile_r=tile_r_eff,
        lanes=lanes,
        n_inner=n_inner,
        confidence=float(confidence),
        smooth_val=float(smooth_val),
    )

    cost = pl.CostEstimate(
        flops=20 * n_pad,
        transcendentals=4 * n_pad,
        bytes_accessed=(3 * n_pad * pred_blocks.dtype.itemsize
                        + n_pad                      # int8 labels
                        + num_splits * lanes * 4),   # partial-sum output
    )

    partials = pl.pallas_call(
        kernel,
        out_shape=jax.ShapeDtypeStruct((num_splits, 1, lanes), jnp.float32),
        grid=(num_splits, n_inner),
        in_specs=[
            # predicts^T as (3, TILE_R, W) blocks marching along the row axis.
            pl.BlockSpec((3, tile_r_eff, lanes),
                         lambda c, i: (0, c * n_inner + i, 0)),
            # labels as dense (TILE_R, W) int8 blocks.
            pl.BlockSpec((tile_r_eff, lanes),
                         lambda c, i: (c * n_inner + i, 0)),
        ],
        # Lane-dense per-split partial sums; block resident across the inner
        # reduction axis (accumulator pattern).
        out_specs=pl.BlockSpec((1, 1, lanes), lambda c, i: (c, 0, 0)),
        compiler_params=pltpu.CompilerParams(
            dimension_semantics=("parallel", "arbitrary"),
            vmem_limit_bytes=32 * 1024 * 1024),
        cost_estimate=cost,
    )(pred_blocks, lab_blocks)

    ce = -jnp.sum(partials) / jnp.float32(n)
    # Regularizer stays in plain JAX (tiny reduction; fuses fine, frees VMEM).
    reg = jnp.float32(beta) * jnp.mean(weight_norm.astype(jnp.float32) ** 2)
    return ce + reg


def _reference(predicts, labels, weight_norm, *, beta, eps):
    n_classes = 3
    logp = jax.nn.log_softmax(predicts.astype(jnp.float32), axis=-1)
    true_dist = jnp.full_like(logp, eps / (n_classes - 1))
    true_dist = true_dist.at[jnp.arange(labels.shape[0]), labels].set(1.0 - eps)
    ce = -jnp.mean(jnp.sum(true_dist * logp, axis=-1))
    reg = beta * jnp.mean(weight_norm.astype(jnp.float32) ** 2)
    return ce + reg


if __name__ == "__main__":
    key = jax.random.PRNGKey(0)
    k1, k2, k3, k4, k5 = jax.random.split(key, 5)

    beta, eps = 0.5, 0.1
    weight_norm = jax.random.normal(k3, (8, 128), dtype=jnp.float32)

    # Small case (tiles auto-shrink; every tile takes the masked-tail path).
    N1 = 256
    p1 = jax.random.normal(k1, (N1, 3), dtype=jnp.float32)
    l1 = jax.random.randint(k2, (N1,), 0, 3, dtype=jnp.int32)
    loss1 = cross_entropy_loss(p1, l1, weight_norm, beta=beta, eps=eps)
    jax.block_until_ready(loss1)
    ref1 = _reference(p1, l1, weight_norm, beta=beta, eps=eps)
    assert jnp.allclose(loss1, ref1, rtol=1e-4, atol=1e-5), (loss1, ref1)

    # Larger case: exercises the unmasked interior path AND the tail mask,
    # plus both blocks of the 'parallel' split.
    N2 = 40000
    p2 = jax.random.normal(k4, (N2, 3), dtype=jnp.float32)
    l2 = jax.random.randint(k5, (N2,), 0, 3, dtype=jnp.int32)
    loss2 = cross_entropy_loss(p2, l2, weight_norm, beta=beta, eps=eps)
    jax.block_until_ready(loss2)
    ref2 = _reference(p2, l2, weight_norm, beta=beta, eps=eps)
    assert jnp.allclose(loss2, ref2, rtol=1e-4, atol=1e-5), (loss2, ref2)

    print("KERNEL_OK")
</pallas_src>

<mosaic_0001>
module attributes {stable_mosaic.version = 11 : i64} {
  func.func @_ce_kernel(%arg0: i32, %arg1: i32, %arg2: memref<3x32x512xf32, #tpu.memory_space<vmem>>, %arg3: memref<32x512xi8, #tpu.memory_space<vmem>>, %arg4: memref<1x1x512xf32, #tpu.memory_space<vmem>>) attributes {dimension_semantics = [#tpu.dimension_semantics<parallel>, #tpu.dimension_semantics<arbitrary>], iteration_bounds = array<i64: 2, 1>, scalar_prefetch = 0 : i64, scratch_operands = 0 : i64, tpu.core_type = #tpu.core_type<tc>, window_params = [{transform_indices = @transform_0, window_bounds = array<i64: 3, 32, 512>}, {transform_indices = @transform_1, window_bounds = array<i64: 32, 512>}, {transform_indices = @transform_2, window_bounds = array<i64: 1, 1, 512>}]} {
    %c0_i32 = arith.constant 0 : i32
    %0 = arith.cmpi eq, %arg1, %c0_i32 : i32
    %1 = arith.extui %0 : i1 to i32
    %c0_i32_0 = arith.constant 0 : i32
    %2 = arith.cmpi ne, %1, %c0_i32_0 : i32
    scf.if %2 {
      %cst_17 = arith.constant 0.000000e+00 : f32
      %49 = vector.broadcast %cst_17 : f32 to vector<1x1x512xf32>
      %c0_18 = arith.constant 0 : index
      %c0_19 = arith.constant 0 : index
      %c0_20 = arith.constant 0 : index
      %50 = vector.load %arg4[%c0_18, %c0_19, %c0_20] : memref<1x1x512xf32, #tpu.memory_space<vmem>>, vector<1x1x512xf32>
      tpu.vector_store %arg4[%c0_18, %c0_19, %c0_20], %49 {strides = array<i32>} : memref<1x1x512xf32, #tpu.memory_space<vmem>>, vector<1x1x512xf32>,
    } else {
    }
    %c0 = arith.constant 0 : index
    %c0_1 = arith.constant 0 : index
    %c0_2 = arith.constant 0 : index
    %3 = vector.load %arg2[%c0, %c0_1, %c0_2] : memref<3x32x512xf32, #tpu.memory_space<vmem>>, vector<1x32x512xf32>
    %4 = vector.shape_cast %3 : vector<1x32x512xf32> to vector<32x512xf32>
    %c1 = arith.constant 1 : index
    %c0_3 = arith.constant 0 : index
    %c0_4 = arith.constant 0 : index
    %5 = vector.load %arg2[%c1, %c0_3, %c0_4] : memref<3x32x512xf32, #tpu.memory_space<vmem>>, vector<1x32x512xf32>
    %6 = vector.shape_cast %5 : vector<1x32x512xf32> to vector<32x512xf32>
    %c2 = arith.constant 2 : index
    %c0_5 = arith.constant 0 : index
    %c0_6 = arith.constant 0 : index
    %7 = vector.load %arg2[%c2, %c0_5, %c0_6] : memref<3x32x512xf32, #tpu.memory_space<vmem>>, vector<1x32x512xf32>
    %8 = vector.shape_cast %7 : vector<1x32x512xf32> to vector<32x512xf32>
    %9 = arith.maximumf %4, %6 : vector<32x512xf32>
    %10 = arith.maximumf %9, %8 : vector<32x512xf32>
    %11 = arith.subf %4, %10 : vector<32x512xf32>
    %12 = arith.subf %6, %10 : vector<32x512xf32>
    %13 = arith.subf %8, %10 : vector<32x512xf32>
    %14 = math.exp %11 : vector<32x512xf32>
    %15 = math.exp %12 : vector<32x512xf32>
    %16 = arith.addf %14, %15 : vector<32x512xf32>
    %17 = math.exp %13 : vector<32x512xf32>
    %18 = arith.addf %16, %17 : vector<32x512xf32>
    %19 = math.log %18 : vector<32x512xf32>
    %20 = arith.subf %11, %19 : vector<32x512xf32>
    %21 = arith.subf %12, %19 : vector<32x512xf32>
    %22 = arith.subf %13, %19 : vector<32x512xf32>
    %c0_7 = arith.constant 0 : index
    %c0_8 = arith.constant 0 : index
    %23 = vector.load %arg3[%c0_7, %c0_8] : memref<32x512xi8, #tpu.memory_space<vmem>>, vector<32x512xi8>
    %24 = arith.extsi %23 : vector<32x512xi8> to vector<32x512xi32>
    %c0_i32_9 = arith.constant 0 : i32
    %25 = vector.broadcast %c0_i32_9 : i32 to vector<32x512xi32>
    %26 = arith.cmpi eq, %24, %25 : vector<32x512xi32>
    %c1_i32 = arith.constant 1 : i32
    %27 = vector.broadcast %c1_i32 : i32 to vector<32x512xi32>
    %28 = arith.cmpi eq, %24, %27 : vector<32x512xi32>
    %29 = arith.select %28, %21, %22 : vector<32x512xi1>, vector<32x512xf32>
    %30 = arith.select %26, %20, %29 : vector<32x512xi1>, vector<32x512xf32>
    %31 = arith.addf %20, %21 : vector<32x512xf32>
    %32 = arith.addf %31, %22 : vector<32x512xf32>
    %cst = arith.constant 5.000000e-02 : f32
    %33 = vector.broadcast %cst : f32 to vector<32x512xf32>
    %34 = arith.mulf %33, %32 : vector<32x512xf32>
    %cst_10 = arith.constant 8.500000e-01 : f32
    %35 = vector.broadcast %cst_10 : f32 to vector<32x512xf32>
    %36 = arith.mulf %35, %30 : vector<32x512xf32>
    %37 = arith.addf %34, %36 : vector<32x512xf32>
    %c1_i32_11 = arith.constant 1 : i32
    %38 = arith.muli %arg0, %c1_i32_11 : i32
    %39 = arith.addi %38, %arg1 : i32
    %c16384_i32 = arith.constant 16384 : i32
    %40 = arith.muli %39, %c16384_i32 : i32
    %c16384_i32_12 = arith.constant 16384 : i32
    %41 = arith.addi %40, %c16384_i32_12 : i32
    %c256_i32 = arith.constant 256 : i32
    %42 = arith.cmpi sle, %41, %c256_i32 : i32
    %43 = arith.extui %42 : i1 to i32
    %c0_i32_13 = arith.constant 0 : i32
    %44 = arith.cmpi ne, %43, %c0_i32_13 : i32
    scf.if %44 {
      %c0_17 = arith.constant 0 : index
      %c0_18 = arith.constant 0 : index
      %c0_19 = arith.constant 0 : index
      %49 = vector.load %arg4[%c0_17, %c0_18, %c0_19] : memref<1x1x512xf32, #tpu.memory_space<vmem>>, vector<1x1x512xf32>
      %cst_20 = arith.constant dense<0.000000e+00> : vector<512xf32>
      %50 = vector.multi_reduction <add>, %37, %cst_20 [0] : vector<32x512xf32> to vector<512xf32>
      %51 = vector.shape_cast %50 : vector<512xf32> to vector<1x512xf32>
      %52 = vector.shape_cast %51 : vector<1x512xf32> to vector<1x1x512xf32>
      %53 = arith.addf %49, %52 : vector<1x1x512xf32>
      %c0_21 = arith.constant 0 : index
      %c0_22 = arith.constant 0 : index
      %c0_23 = arith.constant 0 : index
      %54 = vector.load %arg4[%c0_21, %c0_22, %c0_23] : memref<1x1x512xf32, #tpu.memory_space<vmem>>, vector<1x1x512xf32>
      tpu.vector_store %arg4[%c0_21, %c0_22, %c0_23], %53 {strides = array<i32>} : memref<1x1x512xf32, #tpu.memory_space<vmem>>, vector<1x1x512xf32>,
    } else {
    }
    %c16384_i32_14 = arith.constant 16384 : i32
    %45 = arith.addi %40, %c16384_i32_14 : i32
    %c256_i32_15 = arith.constant 256 : i32
    %46 = arith.cmpi sgt, %45, %c256_i32_15 : i32
    %47 = arith.extui %46 : i1 to i32
    %c0_i32_16 = arith.constant 0 : i32
    %48 = arith.cmpi ne, %47, %c0_i32_16 : i32
    scf.if %48 {
      %49 = tpu.iota {dimensions = array<i32: 0>} : vector<32x512xi32>
      %50 = tpu.iota {dimensions = array<i32: 1>} : vector<32x512xi32>
      %c512_i32 = arith.constant 512 : i32
      %51 = vector.broadcast %c512_i32 : i32 to vector<32x512xi32>
      %52 = arith.muli %49, %51 : vector<32x512xi32>
      %53 = vector.broadcast %40 : i32 to vector<32x512xi32>
      %54 = arith.addi %53, %52 : vector<32x512xi32>
      %55 = arith.addi %54, %50 : vector<32x512xi32>
      %c256_i32_17 = arith.constant 256 : i32
      %56 = vector.broadcast %c256_i32_17 : i32 to vector<32x512xi32>
      %57 = arith.cmpi slt, %55, %56 : vector<32x512xi32>
      %cst_18 = arith.constant 0.000000e+00 : f32
      %58 = vector.broadcast %cst_18 : f32 to vector<32x512xf32>
      %59 = arith.select %57, %37, %58 : vector<32x512xi1>, vector<32x512xf32>
      %c0_19 = arith.constant 0 : index
      %c0_20 = arith.constant 0 : index
      %c0_21 = arith.constant 0 : index
      %60 = vector.load %arg4[%c0_19, %c0_20, %c0_21] : memref<1x1x512xf32, #tpu.memory_space<vmem>>, vector<1x1x512xf32>
      %cst_22 = arith.constant dense<0.000000e+00> : vector<512xf32>
      %61 = vector.multi_reduction <add>, %59, %cst_22 [0] : vector<32x512xf32> to vector<512xf32>
      %62 = vector.shape_cast %61 : vector<512xf32> to vector<1x512xf32>
      %63 = vector.shape_cast %62 : vector<1x512xf32> to vector<1x1x512xf32>
      %64 = arith.addf %60, %63 : vector<1x1x512xf32>
      %c0_23 = arith.constant 0 : index
      %c0_24 = arith.constant 0 : index
      %c0_25 = arith.constant 0 : index
      %65 = vector.load %arg4[%c0_23, %c0_24, %c0_25] : memref<1x1x512xf32, #tpu.memory_space<vmem>>, vector<1x1x512xf32>
      tpu.vector_store %arg4[%c0_23, %c0_24, %c0_25], %64 {strides = array<i32>} : memref<1x1x512xf32, #tpu.memory_space<vmem>>, vector<1x1x512xf32>,
    } else {
    }
    return
  }
  func.func @transform_0(%arg0: i32, %arg1: i32) -> (i32, i32, i32) {
    %c1_i32 = arith.constant 1 : i32
    %0 = arith.muli %arg0, %c1_i32 : i32
    %1 = arith.addi %0, %arg1 : i32
    %c0_i32 = arith.constant 0 : i32
    %c0_i32_0 = arith.constant 0 : i32
    %c0_i32_1 = arith.constant 0 : i32
    return %c0_i32, %1, %c0_i32_0 : i32, i32, i32
  }
  func.func @transform_1(%arg0: i32, %arg1: i32) -> (i32, i32) {
    %c1_i32 = arith.constant 1 : i32
    %0 = arith.muli %arg0, %c1_i32 : i32
    %1 = arith.addi %0, %arg1 : i32
    %c0_i32 = arith.constant 0 : i32
    %c0_i32_0 = arith.constant 0 : i32
    return %1, %c0_i32 : i32, i32
  }
  func.func @transform_2(%arg0: i32, %arg1: i32) -> (i32, i32, i32) {
    %c0_i32 = arith.constant 0 : i32
    %c0_i32_0 = arith.constant 0 : i32
    %c0_i32_1 = arith.constant 0 : i32
    return %arg0, %c0_i32, %c0_i32_0 : i32, i32, i32
  }
}

</mosaic_0001>

<bundles_post_ra>
// kernel: tpu_custom_call.1
= control target key start
LH: loop header
LB: loop body
LE: loop exit
PB: predicated region body
PF: predicated region fallthrough
CT: control target
= control target key end

     0   :  { %7 = vsyncpa [#allocation3], 0  ;;  %s2865_s0 = inlined_call_operand.hbm [shape: f32[3,64,512], index: 0, kind: input, shape index: {}]   ;;  %s2866_s1 = inlined_call_operand.hbm [shape: s8[64,512], index: 1, kind: input, shape index: {}]   ;;  %s2867_s2 = inlined_call_operand.hbm [shape: f32[2,1,512], index: 2, kind: output, shape index: {}]  }
   0x1   :  { %9 = vsyncpa [#allocation3 + $0x1], 0 }
   0x2   :  { %10 = vsyncpa [#allocation6], 0 }
   0x3   :  { %12 = vsyncpa [#allocation6 + $0x1], 0 }
   0x4   :  { %13 = vsyncpa [#allocation4], 0 }
   0x5   :  { %15 = vsyncpa [#allocation4 + $0x1], 0  ;;  %s1504_s9 = smov 0   ;;  %s1506_s10 = smov 0  }
   0x6   :  { %s1508_s11 = smov 0   ;;  %s1510_s12 = smov 0  }
   0x7   :  { %s1512_s13 = smov 0   ;;  %s1514_s14 = smov 0  }
   0x8 LB: > { %s1098_s15 = sadd.s32 4294967295, %s1476_s14   ;;  %s1099_s16 = sadd.s32 4294967294, %s1476_s14   ;;  %s1476_s14 = sphi %s1514_s14, %s21_s14   ;;  %s1472_s13 = sphi %s1512_s13, %s3222_s13   ;;  %s1468_s12 = sphi %s1510_s12, %s3221_s12   ;;  %s1464_s11 = sphi %s1508_s11, %s3220_s11   ;;  %s1460_s10 = sphi %s1506_s10, %s3219_s10   ;;  %s1456_s9 = sphi %s1504_s9, %s3218_s9  }
   0x9   : > { %s33_s17 = sadd.s32 1, %s1472_s13  ;;  %s42_s18 = sadd.s32 1, %s1464_s11 }
   0xa   : > { %p35_p0 = scmp.ge.s32.totalorder %s33_s17, 2  ;;  %p49_p1 = scmp.ne.s32.totalorder %s1464_s11, %s1460_s10 }
   0xb   : > { %p50_p2 = scmp.eq.s32.totalorder %s1476_s14, 0  ;;  %p55_p3 = scmp.ne.s32.totalorder %s1460_s10, %s1456_s9 }
   0xc   : > { %s3224_s17 = smov (%p35_p0, %s33_s17), 0  ;;  %p56_p5 = scmp.eq.s32.totalorder %s1098_s15, 0 }
   0xd   : > { %p1545_p4 = por %p50_p2, %p49_p1  ;;  %s39_s20 = ssub.s32 %s1472_s13, %s3224_s17 }
   0xe   : > { %p107_p6 = scmp.eq.s32.totalorder %s1098_s15, 1  ;;  %p40_p7 = scmp.eq.s32.totalorder %s39_s20, 0 }
   0xf   : > { %p1551_p8 = por %p56_p5, %p55_p3  ;;  %p113_p10 = scmp.eq.s32.totalorder %s1099_s16, 1 }
  0x10   : > { %p1555_p9 = por %p107_p6, %p49_p1  ;;  %p2868_p12 = scmp.ge.s32.totalorder %s1476_s14, 2 }
  0x11   : > { %s2961_s21 = scalar_select %p1551_p8, 1, 0 }
  0x12   : > { %s2962_s22 = scalar_select %p1555_p9, 1, 0 }
  0x13   : > { %s1560_s23 = scalar_select %p40_p7, %s1464_s11, %s42_s18  }
  0x14   : > { %p1562_p11 = por %p113_p10, %p55_p3  ;;  %129 = sbr.rel (%p2868_p12) target bundleno = 65 (0x41), region = 16 }
  0x16   : > { %s2963_s24 = scalar_select %p1562_p11, 1, 0 }
  0x1b   : > { %s1570_s25 = sand.u32 1, %s1464_s11   ;;  %s1154_s27 = sshll.u32 %s1472_s13, 11 }
  0x1c   : > { %s1157_s26 = smul.u32 384, %s1570_s25  ;;  %s1478_s28 = smov 4096  }
  0x1d   : > { %1160 = sst [smem:[#allocation9]] (%p1545_p4), %s1478_s28  ;;  %s145_s4 = scalar_lea.hbm %s2865_s0, %s1154_s27 }
  0x1e   : > { %s1159_s29 = scalar_select %p1545_p4, [#allocation0], [#allocation10] }
  0x1f   : > { %s137_s6 = scalar_lea.vmem [#allocation2], %s1157_s26  ;;  %s1479_s8 = smov 2048  }
  0x20   : > { %s150_s5 = sld [smem:[%s1159_s29]]   ;;  %s158_s7 = sshll.u32 %s137_s6, 4  ;;  %s159_s7 = int_to_ptr.vmem [resolvable:$true] %s158_s7 }
  0x21   : > { %1161 = sst [smem:[#allocation9 + $0x1]] (%p1545_p4), %s1479_s8  ;;  %s1480_s15 = smov 4  }
  0x22   : > { %1162 = sst [smem:[#allocation9 + $0x2]] (%p1545_p4), %s1480_s15  ;;  %s1481_s16 = smov 512  }
  0x23   : > { %1163 = sst [smem:[#allocation9 + $0x3]] (%p1545_p4), %s1481_s16  ;;  %s1482_s18 = smov 32  }
  0x24   : > { %1164 = sst [smem:[#allocation9 + $0x4]] (%p1545_p4), %s1481_s16  ;;  %s134_s26 = scalar_lea.sflag [#allocation3], %s1570_s25 }
  0x25   : > { %1165 = sst [smem:[#allocation9 + $0x5]] (%p1545_p4), %s1482_s18  ;;  %s1483_s28 = smov [#allocation8]  }
  0x26   : > { %s1105_s20 = sshll.u32 %s150_s5, 26  ;;  %s1107_s29 = sshll.u32 %s1570_s25, 5 }
  0x27   : > { %s1106_s27 = sadd.s32 134217728, %s1105_s20  ;;  %s1155_s30 = sshll.u32 %s1472_s13, 9 }
  0x28   : > { %1166 = dma.general (%p1545_p4), %s145_s4, 6144, %s159_s7, %s134_s26, %s1483_s28, [#allocation9], %s1106_s27, 0  }
  0x29   : > { %s1599_s8 = scalar_lea.hbm %s2866_s1, %s1155_s30  ;;  %s185_s5 = scalar_lea.vmem [#allocation5], %s1107_s29 }
  0x2a   : > { %s194_s15 = sshll.u32 %s185_s5, 4  ;;  %s182_s16 = scalar_lea.sflag [#allocation6], %s1570_s25  ;;  %s195_s15 = int_to_ptr.vmem [resolvable:$true] %s194_s15 }
  0x2b   : > { %s1362_s4 = scalar_lea.hbm %s1599_s8, 512  ;;  %s1366_s20 = scalar_lea.hbm %s2866_s1, 1024 }
  0x2c   : > { %p1363_p13 = scmp.ne.s32.totalorder %s1599_s8, %s1362_s4  ;;  %p1367_p2 = scmp.lt.u32.totalorder %s1599_s8, %s2866_s1 }
  0x2d   : > { %p1368_p3 = scmp.lt.u32.totalorder %s1366_s20, %s1362_s4  ;;  %p1370_p6 = scmp.lt.u32.totalorder %s1362_s4, %s1599_s8 }
  0x2e   : > { %p1364_p0 = pnand %p1363_p13, %p1545_p4 }
  0x2f   : > { %p1369_p5 = por %p1368_p3, %p1367_p2 }
  0x30   : > { %p1365_p1 = pneg %p1364_p0 }
  0x31   : > { %p1371_p7 = por %p1370_p6, %p1369_p5 }
  0x33   : > { %p1372_p10 = pnand %p1371_p7, %p1365_p1 }
  0x35   : > { %1375 = shalt.err (!%p1372_p10)
}
  0x36   : > { %s1376_s25 = scalar_lea.vmem %s195_s15, 512  ;;  %s1484_s28 = smov [#allocation5]  }
  0x37   : > { %p1377_p12 = scmp.ne.s32.totalorder %s195_s15, %s1376_s25  ;;  %s1380_s29 = sshll.u32 %s1484_s28, 4  ;;  %s1381_s29 = int_to_ptr.vmem [resolvable:$false] %s1380_s29 }
  0x38   : > { %s1382_s30 = scalar_lea.vmem %s1381_s29, 1024  ;;  %p1383_p11 = scmp.lt.s32.totalorder %s195_s15, %s1381_s29 }
  0x39   : > { %p1378_p13 = pnand %p1377_p12, %p1545_p4  ;;  %p1384_p9 = scmp.lt.s32.totalorder %s1382_s30, %s1376_s25 }
  0x3b   : > { %p1379_p0 = pneg %p1378_p13  ;;  %p1385_p8 = por %p1384_p9, %p1383_p11 }
  0x3d   : > { %p1386_p2 = pnand %p1385_p8, %p1379_p0 }
  0x3f   : > { %1389 = shalt.err (!%p1386_p2)
}
  0x40   : > { %1167 = dma.hbm_to_vmem [thread:$0]  (%p1545_p4), %s1599_s8, 512, %s195_s15, %s182_s16  }
  0x41 PF: > { %p1110_p1 = scmp.ge.s32.totalorder %s1476_s14, 1  ;;  %p199_p3 = scmp.lt.s32.totalorder %s1476_s14, 3 }
  0x43   : > { %p200_p12 = pnand %p1110_p1, %p199_p3 }
  0x45   : > { %203 = sbr.rel (%p200_p12) target bundleno = 330 (0x14a), region = 28 }
  0x4c   : > { %s1622_s3 = sand.u32 1, %s1460_s10   ;;  %p2964_p8 = scmp.ne.s32.totalorder %s2961_s21, 0 }
  0x4d   : > { %s1158_s6 = smul.u32 384, %s1622_s3  ;;  %s206_s5 = scalar_lea.sflag [#allocation3], %s1622_s3 }
  0x4f   : > { %s1626_s4 = scalar_lea.vmem [#allocation2], %s1158_s6 }
  0x50   : > { %1443 = dma.done.wait (%p2964_p8), %s206_s5, 6144  }
  0x51   : > { %1445 = vsyncadd (%p2964_p8), %s206_s5, 4294961152  ;;  %s1111_s19 = sshll.u32 %s1622_s3, 5  ;;  %s215_s8 = scalar_lea.sflag [#allocation6], %s1622_s3 }
  0x52   : > { %s1634_s15 = scalar_lea.vmem [#allocation5], %s1111_s19 }
  0x53   : > { %1447 = dma.done.wait (%p2964_p8), %s215_s8, 512  }
  0x54   : > { %1449 = vsyncadd (%p2964_p8), %s215_s8, 4294966784  ;;  %s1112_s16 = sshll.u32 %s1622_s3, 2  ;;  %v2871_v0 = vlaneseq  ;;  %v2965_v1 = vmov 0  ;;  %v1485_v2 = vmov 0.0   ;;  %s1145_s7 = sshll.u32 %s1468_s12, 14  ;;  %v256_v3 = vld [vmem:[%s1626_s4] sm:$0xff] }
  0x55   : > { %s1646_s21 = scalar_lea.vmem [#allocation7], %s1112_s16  ;;  %s1654_s18 = sadd.s32 16384, %s1145_s7  ;;  %v257_v4 = vld [vmem:[%s1626_s4 + $0x8] sm:$0xff]  ;;  %v258_v5 = vld [vmem:[%s1626_s4 + $0x10] sm:$0xff]  ;;  %v1660_v6 = vld [vmem:[%s1626_s4 + $0x80] sm:$0xff] }
  0x56   : > { %vm1642_vm0 = vcmp.lt.s32.totalorder %v2871_v0, 512  ;;  %v1663_v7 = vld [vmem:[%s1626_s4 + $0x88] sm:$0xff]  ;;  %v1666_v8 = vld [vmem:[%s1626_s4 + $0x90] sm:$0xff]  ;;  %v259_v9 = vld [vmem:[%s1626_s4 + $0x18] sm:$0xff]  ;;  %v306_v18 = vmax.f32 %v256_v3, %v1660_v6  ;;  %p1146_p4 = scmp.gt.s32.totalorder %s1654_s18, 256 }
  0x57   : > { %v2966_v1 = vsel %vm1642_vm0, 4294967295, %v2965_v1  ;;  %255 = vst.msk [vmem:[%s1646_s21] sm:$0xf] %vm1642_vm0, %v1485_v2  ;;  %v1670_v10 = vld [vmem:[%s1626_s4 + $0x20] sm:$0xff]  ;;  %v1673_v11 = vld [vmem:[%s1626_s4 + $0x98] sm:$0xff]  ;;  %v1676_v12 = vld [vmem:[%s1626_s4 + $0x28] sm:$0xff]  ;;  %v307_v19 = vmax.f32 %v257_v4, %v1663_v7  ;;  %v308_v20 = vmax.f32 %v258_v5, %v1666_v8 }
  0x58   : > { %2967 = vst [vmem:[#allocation14_spill] sm:$0xff] %v2966_v1  ;;  %v1679_v13 = vld [vmem:[%s1626_s4 + $0x30] sm:$0xff]  ;;  %v1682_v14 = vld [vmem:[%s1626_s4 + $0xa0] sm:$0xff]  ;;  %v1685_v15 = vld [vmem:[%s1626_s4 + $0x38] sm:$0xff]  ;;  %v309_v25 = vmax.f32 %v259_v9, %v1673_v11 }
  0x59   : > { %v1688_v16 = vld [vmem:[%s1626_s4 + $0xa8] sm:$0xff]  ;;  %v1691_v17 = vld [vmem:[%s1626_s4 + $0xb0] sm:$0xff]  ;;  %v1697_v21 = vld [vmem:[%s1626_s4 + $0x40] sm:$0xff]  ;;  %v310_v29 = vmax.f32 %v1670_v10, %v1682_v14 }
  0x5a   : > { %v1700_v22 = vld [vmem:[%s1626_s4 + $0x100] sm:$0xff]  ;;  %v1703_v23 = vld [vmem:[%s1626_s4 + $0x108] sm:$0xff]  ;;  %v1706_v24 = vld [vmem:[%s1626_s4 + $0x110] sm:$0xff]  ;;  %v311_v33 = vmax.f32 %v1676_v12, %v1688_v16  ;;  %v312_v38 = vmax.f32 %v1679_v13, %v1691_v17 }
  0x5b   : > { %v1710_v26 = vld [vmem:[%s1626_s4 + $0x48] sm:$0xff]  ;;  %v1713_v27 = vld [vmem:[%s1626_s4 + $0xb8] sm:$0xff]  ;;  %v1721_v30 = vld [vmem:[%s1626_s4 + $0x50] sm:$0xff]  ;;  %v1746_v39 = vmax.f32 %v306_v18, %v1700_v22  ;;  %v1749_v40 = vmax.f32 %v307_v19, %v1703_v23  ;;  %v1752_v41 = vmax.f32 %v308_v20, %v1706_v24 }
  0x5c   : > { %v1716_v28 = vld [vmem:[%s1626_s4 + $0x118] sm:$0xff]  ;;  %v1724_v31 = vld [vmem:[%s1626_s4 + $0xc0] sm:$0xff]  ;;  %v1735_v35 = vld [vmem:[%s1626_s4 + $0xc8] sm:$0xff]  ;;  %v313_v45 = vmax.f32 %v1685_v15, %v1713_v27 }
  0x5d   : > { %v1727_v32 = vld [vmem:[%s1626_s4 + $0x120] sm:$0xff]  ;;  %v1732_v34 = vld [vmem:[%s1626_s4 + $0x58] sm:$0xff]  ;;  %v1738_v36 = vld [vmem:[%s1626_s4 + $0xd0] sm:$0xff]  ;;  %v1766_v46 = vmax.f32 %v309_v25, %v1716_v28  ;;  %v314_v50 = vmax.f32 %v1697_v21, %v1724_v31  ;;  %v315_v55 = vmax.f32 %v1710_v26, %v1735_v35  ;;  %v1811_v62 = vsub.f32 %v256_v3, %v1746_v39 }
  0x5e   : > { %2968 = vst [vmem:[#allocation15_spill] sm:$0xff] %v1727_v32  ;;  %v1741_v37 = vld [vmem:[%s1626_s4 + $0x128] sm:$0xff]  ;;  %v1755_v42 = vld [vmem:[%s1626_s4 + $0x60] sm:$0xff]  ;;  %v1761_v44 = vld [vmem:[%s1626_s4 + $0x130] sm:$0xff]  ;;  %v1780_v51 = vmax.f32 %v310_v29, %v1727_v32  ;;  %v316_v56 = vmax.f32 %v1721_v30, %v1738_v36  ;;  %v1814_v63 = vsub.f32 %v257_v4, %v1749_v40  ;;  %v1817_v2 = vsub.f32 %v258_v5, %v1752_v41 }
  0x5f   : > { %2969 = vst [vmem:[#allocation16_spill] sm:$0xff] %v1741_v37  ;;  %v1758_v43 = vld [vmem:[%s1626_s4 + $0x68] sm:$0xff]  ;;  %2970 = vst [vmem:[#allocation17_spill] sm:$0xff] %v1761_v44  ;;  %v1769_v47 = vld [vmem:[%s1626_s4 + $0x70] sm:$0xff]  ;;  %v1796_v57 = vmax.f32 %v311_v33, %v1741_v37  ;;  %v1808_v61 = vmax.f32 %v312_v38, %v1761_v44  ;;  %v1825_v20 = vsub.f32 %v259_v9, %v1766_v46 }
  0x60   : > { %v1772_v48 = vld [vmem:[%s1626_s4 + $0xd8] sm:$0xff]  ;;  %v1783_v52 = vld [vmem:[%s1626_s4 + $0xe0] sm:$0xff]  ;;  %v1786_v53 = vld [vmem:[%s1626_s4 + $0xe8] sm:$0xff]  ;;  %2974 = vst [vmem:[#allocation21_spill] sm:$0xff] %v1811_v62  ;;  %v1843_v38 = vsub.f32 %v1670_v10, %v1780_v51  ;;  %v388_v44 = vmul.f32 1.442695, %v1814_v63 }
  0x61   : > { %v1775_v49 = vld [vmem:[%s1626_s4 + $0x138] sm:$0xff]  ;;  %v1789_v54 = vld [vmem:[%s1626_s4 + $0x140] sm:$0xff]  ;;  %v1799_v58 = vld [vmem:[%s1626_s4 + $0xf0] sm:$0xff]  ;;  %2975 = vst [vmem:[#allocation22_spill] sm:$0xff] %v1814_v63  ;;  %v317_v18 = vmax.f32 %v1732_v34, %v1772_v48  ;;  %v318_v4 = vmax.f32 %v1755_v42, %v1783_v52  ;;  %v319_v5 = vmax.f32 %v1758_v43, %v1786_v53  ;;  %v1865_v10 = vsub.f32 %v1679_v13, %v1808_v61 }
  0x62   : > { %2971 = vst [vmem:[#allocation18_spill] sm:$0xff] %v1775_v49  ;;  %2972 = vst [vmem:[#allocation19_spill] sm:$0xff] %v1789_v54  ;;  %v1802_v59 = vld [vmem:[%s1626_s4 + $0x148] sm:$0xff]  ;;  %v1805_v60 = vld [vmem:[%s1626_s4 + $0x150] sm:$0xff]  ;;  %v1822_v19 = vmax.f32 %v313_v45, %v1775_v49  ;;  %v1839_v33 = vmax.f32 %v314_v50, %v1789_v54  ;;  %v320_v0 = vmax.f32 %v1769_v47, %v1799_v58  ;;  %v386_v54 = vmul.f32 1.442695, %v1811_v62 }
  0x63   : > { %2973 = vst [vmem:[#allocation20_spill] sm:$0xff] %v1805_v60  ;;  %2976 = vst [vmem:[#allocation23_spill] sm:$0xff] %v1817_v2  ;;  %v271_v25 = vld [vmem:[%s1626_s4 + $0x78] sm:$0xff]  ;;  %v1846_v9 = vld [vmem:[%s1626_s4 + $0x160] sm:$0xff]  ;;  %v1854_v1 = vmax.f32 %v315_v55, %v1802_v59  ;;  %v1857_v49 = vmax.f32 %v316_v56, %v1805_v60  ;;  %v1861_v50 = vsub.f32 %v1676_v12, %v1796_v57  ;;  %v390_v37 = vmul.f32 1.442695, %v1817_v2 }
  0x64   : > { %2977 = vst [vmem:[#allocation24_spill] sm:$0xff] %v1825_v20  ;;  %v1829_v29 = vld [vmem:[%s1626_s4 + $0xf8] sm:$0xff]  ;;  %v1849_v45 = vld [vmem:[%s1626_s4 + $0x168] sm:$0xff]  ;;  %2978 = vst [vmem:[#allocation25_spill] sm:$0xff] %v1865_v10  ;;  %v1879_v12 = vsub.f32 %v1685_v15, %v1822_v19  ;;  %v392_v13 = vmul.f32 1.442695, %v1825_v20  ;;  %v1886_v62 = vmax.f32 %v318_v4, %v1846_v9  ;;  %v1890_v2 = vsub.f32 %v1697_v21, %v1839_v33 }
  0x65   : > { %v1832_v3 = vld [vmem:[%s1626_s4 + $0x158] sm:$0xff]  ;;  %v1871_v32 = vld [vmem:[%s1626_s4 + $0x170] sm:$0xff]  ;;  %v321_v55 = vmax.f32 %v271_v25, %v1829_v29  ;;  %1234 = vpow2.f32 %v386_v54  ;;  %v394_v63 = vmul.f32 1.442695, %v1843_v38  ;;  %v1898_v15 = vsub.f32 %v1710_v26, %v1854_v1 }
  0x66   : > { %v1875_v56 = vmax.f32 %v317_v18, %v1832_v3  ;;  %2979 = vst [vmem:[#allocation26_spill] sm:$0xff] %v1879_v12  ;;  %v1883_v60 = vld [vmem:[%s1626_s4 + $0x178] sm:$0xff]  ;;  %2980 = vst [vmem:[#allocation27_spill] sm:$0xff] %v1890_v2  ;;  %v1894_v18 = vmax.f32 %v319_v5, %v1849_v45  ;;  %1236 = vpow2.f32 %v388_v44  ;;  %v396_v20 = vmul.f32 1.442695, %v1861_v50 }
  0x67   : > { %2981 = vst [vmem:[#allocation28_spill] sm:$0xff] %v1898_v15  ;;  %v1902_v4 = vmax.f32 %v320_v0, %v1871_v32  ;;  %v1906_v21 = vsub.f32 %v1721_v30, %v1857_v49  ;;  %1238 = vpow2.f32 %v390_v37  ;;  %v398_v54 = vmul.f32 1.442695, %v1865_v10 }
  0x68   : > { %v1910_v5 = vmax.f32 %v321_v55, %v1883_v60  ;;  %v1914_v26 = vsub.f32 %v1732_v34, %v1875_v56  ;;  %1240 = vpow2.f32 %v392_v13  ;;  %v400_v44 = vmul.f32 1.442695, %v1879_v12 }
  0x69   : > { %2982 = vst [vmem:[#allocation29_spill] sm:$0xff] %v1906_v21  ;;  %v1919_v0 = vsub.f32 %v1755_v42, %v1886_v62  ;;  %1242 = vpow2.f32 %v394_v63  ;;  %v402_v30 = vmul.f32 1.442695, %v1890_v2  ;;  %v1924_v37 = vsub.f32 %v1758_v43, %v1894_v18 }
  0x6a   : > { %2983 = vst [vmem:[#allocation30_spill] sm:$0xff] %v1914_v26  ;;  %1244 = vpow2.f32 %v396_v20  ;;  %v404_v55 = vmul.f32 1.442695, %v1898_v15  ;;  %v1929_v34 = vsub.f32 %v1769_v47, %v1902_v4  ;;  %v406_v13 = vmul.f32 1.442695, %v1906_v21 }
  0x6b   : > { %2984 = vst [vmem:[#allocation31_spill] sm:$0xff] %v1919_v0  ;;  %2985 = vst [vmem:[#allocation32_spill] sm:$0xff] %v1924_v37  ;;  %1246 = vpow2.f32 %v398_v54  ;;  %v1933_v42 = vsub.f32 %v271_v25, %v1910_v5  ;;  %v408_v63 = vmul.f32 1.442695, %v1914_v26  ;;  %v1938_v43 = vsub.f32 %v1660_v6, %v1746_v39 }
  0x6c   : > { %2986 = vst [vmem:[#allocation33_spill] sm:$0xff] %v1929_v34  ;;  %1248 = vpow2.f32 %v400_v44  ;;  %v410_v20 = vmul.f32 1.442695, %v1919_v0  ;;  %v1943_v47 = vsub.f32 %v1663_v7, %v1749_v40  ;;  %v412_v54 = vmul.f32 1.442695, %v1924_v37 }
  0x6d   : > { %2987 = vst [vmem:[#allocation34_spill] sm:$0xff] %v1933_v42  ;;  %1250 = vpow2.f32 %v402_v30  ;;  %v1950_v25 = vsub.f32 %v1666_v8, %v1752_v41  ;;  %v414_v6 = vmul.f32 1.442695, %v1929_v34  ;;  %v1957_v30 = vsub.f32 %v1673_v11, %v1766_v46 }
  0x6e   : > { %1252 = vpow2.f32 %v404_v55  ;;  %v416_v7 = vmul.f32 1.442695, %v1933_v42  ;;  %v1964_v37 = vsub.f32 %v1682_v14, %v1780_v51  ;;  %v418_v8 = vmul.f32 1.442695, %v1938_v43 }
  0x6f   : > { %v1946_v21 = vpop.eup %1234  ;;  %1254 = vpow2.f32 %v406_v13  ;;  %v1971_v34 = vsub.f32 %v1688_v16, %v1796_v57  ;;  %v420_v11 = vmul.f32 1.442695, %v1943_v47  ;;  %v1978_v42 = vsub.f32 %v1691_v17, %v1808_v61 }
  0x70   : > { %v1953_v44 = vpop.eup %1236  ;;  %1256 = vpow2.f32 %v408_v63  ;;  %v422_v14 = vmul.f32 1.442695, %v1950_v25  ;;  %v1985_v0 = vsub.f32 %v1713_v27, %v1822_v19  ;;  %v424_v16 = vmul.f32 1.442695, %v1957_v30 }
  0x71   : > { %v1960_v55 = vpop.eup %1238  ;;  %1258 = vpow2.f32 %v410_v20  ;;  %2988 = vst [vmem:[#allocation35_spill] sm:$0xff] %v1971_v34  ;;  %2989 = vst [vmem:[#allocation36_spill] sm:$0xff] %v1978_v42  ;;  %v1992_v26 = vsub.f32 %v1724_v31, %v1839_v33  ;;  %v426_v17 = vmul.f32 1.442695, %v1964_v37  ;;  %v1999_v15 = vsub.f32 %v1735_v35, %v1854_v1 }
  0x72   : > { %v1967_v13 = vpop.eup %1240  ;;  %1260 = vpow2.f32 %v412_v54  ;;  %2990 = vst [vmem:[#allocation37_spill] sm:$0xff] %v1985_v0  ;;  %v428_v27 = vmul.f32 1.442695, %v1971_v34  ;;  %v2006_v2 = vsub.f32 %v1738_v36, %v1857_v49  ;;  %v430_v31 = vmul.f32 1.442695, %v1978_v42 }
  0x73   : > { %v1974_v63 = vpop.eup %1242  ;;  %1262 = vpow2.f32 %v414_v6  ;;  %2991 = vst [vmem:[#allocation38_spill] sm:$0xff] %v1992_v26  ;;  %2992 = vst [vmem:[#allocation39_spill] sm:$0xff] %v1999_v15  ;;  %v2013_v12 = vsub.f32 %v1772_v48, %v1875_v56  ;;  %v432_v35 = vmul.f32 1.442695, %v1985_v0  ;;  %v2020_v10 = vsub.f32 %v1783_v52, %v1886_v62 }
  0x74   : > { %v1981_v20 = vpop.eup %1244  ;;  %1264 = vpow2.f32 %v416_v7  ;;  %2993 = vst [vmem:[#allocation40_spill] sm:$0xff] %v2006_v2  ;;  %v434_v36 = vmul.f32 1.442695, %v1992_v26  ;;  %v2027_v42 = vsub.f32 %v1786_v53, %v1894_v18  ;;  %v436_v48 = vmul.f32 1.442695, %v1999_v15 }
  0x75   : > { %v1988_v54 = vpop.eup %1246  ;;  %1266 = vpow2.f32 %v418_v8  ;;  %2994 = vst [vmem:[#allocation41_spill] sm:$0xff] %v2013_v12  ;;  %2995 = vst [vmem:[#allocation42_spill] sm:$0xff] %v2020_v10  ;;  %v2034_v0 = vsub.f32 %v1799_v58, %v1902_v4  ;;  %v438_v52 = vmul.f32 1.442695, %v2006_v2  ;;  %v2041_v26 = vsub.f32 %v1829_v29, %v1910_v5 }
  0x76   : > { %v1995_v6 = vpop.eup %1248  ;;  %1268 = vpow2.f32 %v420_v11  ;;  %2996 = vst [vmem:[#allocation43_spill] sm:$0xff] %v2027_v42  ;;  %v440_v53 = vmul.f32 1.442695, %v2013_v12  ;;  %v2048_v15 = vsub.f32 %v1700_v22, %v1746_v39  ;;  %v442_v58 = vmul.f32 1.442695, %v2020_v10 }
  0x77   : > { %v2002_v7 = vpop.eup %1250  ;;  %1270 = vpow2.f32 %v422_v14  ;;  %2997 = vst [vmem:[#allocation44_spill] sm:$0xff] %v2034_v0  ;;  %2998 = vst [vmem:[#allocation45_spill] sm:$0xff] %v2041_v26  ;;  %v2055_v2 = vsub.f32 %v1703_v23, %v1749_v40  ;;  %v444_v29 = vmul.f32 1.442695, %v2027_v42  ;;  %v2060_v12 = vsub.f32 %v1706_v24, %v1752_v41 }
  0x78   : > { %v2009_v8 = vpop.eup %1252  ;;  %1272 = vpow2.f32 %v424_v16  ;;  %v446_v22 = vmul.f32 1.442695, %v2034_v0  ;;  %v448_v23 = vmul.f32 1.442695, %v2041_v26  ;;  %v466_v24 = vmul.f32 1.442695, %v2048_v15 }
  0x79   : > { %v2016_v11 = vpop.eup %1254  ;;  %1274 = vpow2.f32 %v426_v17 }
  0x7a   : > { %v2023_v14 = vpop.eup %1256  ;;  %1276 = vpow2.f32 %v428_v27 }
  0x7b   : > { %v2030_v16 = vpop.eup %1258  ;;  %1278 = vpow2.f32 %v430_v31 }
  0x7c   : > { %v2037_v17 = vpop.eup %1260  ;;  %1280 = vpow2.f32 %v432_v35 }
  0x7d   : > { %v2044_v27 = vpop.eup %1262  ;;  %1282 = vpow2.f32 %v434_v36  ;;  %v2065_v36 = vsub.f32 %v1716_v28, %v1766_v46  ;;  %v468_v28 = vmul.f32 1.442695, %v2055_v2 }
  0x7e   : > { %v2051_v31 = vpop.eup %1264  ;;  %1284 = vpow2.f32 %v436_v48  ;;  %v3000_v48 = vld [vmem:[#allocation15_spill] sm:$0xff] }
  0x7f   : > { %v1267_v35 = vpop.eup %1266  ;;  %1286 = vpow2.f32 %v438_v52  ;;  %2999 = vst [vmem:[#allocation46_spill] sm:$0xff] %v2065_v36  ;;  %v2070_v42 = vsub.f32 %v3000_v48, %v1780_v51  ;;  %v3001_v52 = vld [vmem:[#allocation16_spill] sm:$0xff]  ;;  %v470_v51 = vmul.f32 1.442695, %v2060_v12 }
  0x80   : > { %v1269_v39 = vpop.eup %1268  ;;  %1288 = vpow2.f32 %v440_v53  ;;  %v2075_v0 = vsub.f32 %v3001_v52, %v1796_v57  ;;  %v3002_v53 = vld [vmem:[#allocation17_spill] sm:$0xff]  ;;  %v472_v57 = vmul.f32 1.442695, %v2065_v36 }
  0x81   : > { %v1271_v40 = vpop.eup %1270  ;;  %1290 = vpow2.f32 %v442_v58  ;;  %v2080_v26 = vsub.f32 %v3002_v53, %v1808_v61  ;;  %v3003_v58 = vld [vmem:[#allocation18_spill] sm:$0xff]  ;;  %v474_v61 = vmul.f32 1.442695, %v2070_v42 }
  0x82   : > { %v1273_v41 = vpop.eup %1272  ;;  %1292 = vpow2.f32 %v444_v29  ;;  %v2085_v10 = vsub.f32 %v3003_v58, %v1822_v19  ;;  %v3004_v29 = vld [vmem:[#allocation19_spill] sm:$0xff]  ;;  %v476_v19 = vmul.f32 1.442695, %v2075_v0 }
  0x83   : > { %v1275_v46 = vpop.eup %1274  ;;  %1294 = vpow2.f32 %v446_v22  ;;  %v2090_v34 = vsub.f32 %v3004_v29, %v1839_v33  ;;  %v2095_v22 = vsub.f32 %v1802_v59, %v1854_v1  ;;  %v478_v33 = vmul.f32 1.442695, %v2080_v26 }
  0x84   : > { %v1277_v48 = vpop.eup %1276  ;;  %1296 = vpow2.f32 %v448_v23  ;;  %v3007_v23 = vld [vmem:[#allocation20_spill] sm:$0xff]  ;;  %v480_v1 = vmul.f32 1.442695, %v2085_v10 }
  0x85   : > { %v1279_v52 = vpop.eup %1278  ;;  %3005 = vst [vmem:[#allocation15_spill] sm:$0xff] %v2090_v34  ;;  %1298 = vpow2.f32 %v466_v24  ;;  %3006 = vst [vmem:[#allocation16_spill] sm:$0xff] %v2095_v22  ;;  %v2100_v36 = vsub.f32 %v3007_v23, %v1857_v49  ;;  %v2105_v24 = vsub.f32 %v1832_v3, %v1875_v56  ;;  %v482_v49 = vmul.f32 1.442695, %v2090_v34 }
  0x86   : > { %v1281_v53 = vpop.eup %1280  ;;  %1300 = vpow2.f32 %v468_v28  ;;  %v2110_v28 = vsub.f32 %v1846_v9, %v1886_v62  ;;  %v484_v3 = vmul.f32 1.442695, %v2095_v22 }
  0x87   : > { %v1283_v58 = vpop.eup %1282  ;;  %3008 = vst [vmem:[#allocation17_spill] sm:$0xff] %v2100_v36  ;;  %1302 = vpow2.f32 %v470_v51  ;;  %v2115_v51 = vsub.f32 %v1849_v45, %v1894_v18  ;;  %v486_v62 = vmul.f32 1.442695, %v2100_v36  ;;  %v488_v45 = vmul.f32 1.442695, %v2105_v24 }
  0x88   : > { %v1285_v29 = vpop.eup %1284  ;;  %1304 = vpow2.f32 %v472_v57  ;;  %v2120_v57 = vsub.f32 %v1871_v32, %v1902_v4  ;;  %v490_v22 = vmul.f32 1.442695, %v2110_v28  ;;  %v451_v32 = vadd.f32 %v1269_v39, %v1953_v44 }
  0x89   : > { %v1287_v59 = vpop.eup %1286  ;;  %1306 = vpow2.f32 %v474_v61  ;;  %3009 = vst [vmem:[#allocation18_spill] sm:$0xff] %v2115_v51  ;;  %v2125_v61 = vsub.f32 %v1883_v60, %v1910_v5  ;;  %v492_v4 = vmul.f32 1.442695, %v2115_v51  ;;  %v452_v36 = vadd.f32 %v1271_v40, %v1960_v55 }
  0x8a   : > { %v1289_v23 = vpop.eup %1288  ;;  %1308 = vpow2.f32 %v476_v19  ;;  %3010 = vst [vmem:[#allocation19_spill] sm:$0xff] %v2120_v57  ;;  %v450_v19 = vadd.f32 %v1267_v35, %v1946_v21  ;;  %v494_v60 = vmul.f32 1.442695, %v2120_v57  ;;  %v456_v40 = vadd.f32 %v1279_v52, %v1988_v54 }
  0x8b   : > { %v1291_v56 = vpop.eup %1290  ;;  %1310 = vpow2.f32 %v478_v33  ;;  %v496_v21 = vmul.f32 1.442695, %v2125_v61  ;;  %v460_v54 = vadd.f32 %v1287_v59, %v2016_v11  ;;  %v461_v52 = vadd.f32 %v1289_v23, %v2023_v14 }
  0x8c   : > { %v1293_v9 = vpop.eup %1292  ;;  %1312 = vpow2.f32 %v480_v1  ;;  %v453_v1 = vadd.f32 %v1273_v41, %v1967_v13  ;;  %v457_v13 = vadd.f32 %v1281_v53, %v1995_v6 }
  0x8d   : > { %v1295_v18 = vpop.eup %1294  ;;  %1314 = vpow2.f32 %v482_v49  ;;  %v454_v49 = vadd.f32 %v1275_v46, %v1974_v63  ;;  %v458_v63 = vadd.f32 %v1283_v58, %v2002_v7  ;;  %v462_v58 = vadd.f32 %v1291_v56, %v2030_v16 }
  0x8e   : > { %v1297_v34 = vpop.eup %1296  ;;  %1316 = vpow2.f32 %v484_v3  ;;  %v455_v3 = vadd.f32 %v1277_v48, %v1981_v20  ;;  %v459_v20 = vadd.f32 %v1285_v29, %v2009_v8  ;;  %v2146_v8 = vld [vmem:[%s1634_s15] sm:$0xff]  ;;  %v463_v11 = vadd.f32 %v1293_v9, %v2037_v17 }
  0x8f   : > { %v1299_v33 = vpop.eup %1298  ;;  %1318 = vpow2.f32 %v486_v62  ;;  %3011 = vst [vmem:[#allocation20_spill] sm:$0xff] %v2146_v8  ;;  %v464_v23 = vadd.f32 %v1295_v18, %v2044_v27  ;;  %v465_v56 = vadd.f32 %v1297_v34, %v2051_v31  ;;  %v598_v17 = vunpack.c.0.s8 %v2146_v8 }
  0x90   : > { %v1301_v5 = vpop.eup %1300  ;;  %1320 = vpow2.f32 %v488_v45  ;;  %v498_v44 = vadd.f32 %v1299_v33, %v450_v19  ;;  %v2157_v33 = vld [vmem:[%s1634_s15 + $0x18] sm:$0xff] }
  0x91   : > { %v1303_v35 = vpop.eup %1302  ;;  %1322 = vpow2.f32 %v490_v22  ;;  %v499_v51 = vadd.f32 %v1301_v5, %v451_v32  ;;  %3014 = vst [vmem:[#allocation49_spill] sm:$0xff] %v2157_v33  ;;  %v2914_v18 = vunpack.c.0.s8 %v2157_v33  ;;  %vm2214_vm1 = vcmp.eq.s32.totalorder %v598_v17, 1 }
  0x92   : > { %v1305_v39 = vpop.eup %1304  ;;  %1324 = vpow2.f32 %v492_v4  ;;  %v500_v62 = vadd.f32 %v1303_v35, %v452_v36  ;;  %vm2328_vm14 = vcmp.eq.s32.totalorder %v598_v17, 0 }
  0x93   : > { %v1307_v55 = vpop.eup %1306  ;;  %1326 = vpow2.f32 %v494_v60  ;;  %v501_v41 = vadd.f32 %v1305_v39, %v453_v1  ;;  %vm2241_vm4 = vcmp.eq.s32.totalorder %v2914_v18, 1 }
  0x94   : > { %v1309_v57 = vpop.eup %1308  ;;  %1328 = vpow2.f32 %v496_v21  ;;  %v502_v46 = vadd.f32 %v1307_v55, %v454_v49  ;;  %v2911_v49 = vunpack.c.1.s8 %v2146_v8 }
  0x95   : > { %v1311_v45 = vpop.eup %1310  ;;  %1330 = vlog2.f32 %v498_v44  ;;  %v503_v48 = vadd.f32 %v1309_v57, %v455_v3  ;;  %v2153_v57 = vld [vmem:[%s1634_s15 + $0x10] sm:$0xff] }
  0x96   : > { %v1313_v22 = vpop.eup %1312  ;;  %1332 = vlog2.f32 %v499_v51  ;;  %v504_v36 = vadd.f32 %v1311_v45, %v456_v40  ;;  %v2150_v51 = vld [vmem:[%s1634_s15 + $0x8] sm:$0xff]  ;;  %3013 = vst [vmem:[#allocation48_spill] sm:$0xff] %v2153_v57  ;;  %v2915_v21 = vunpack.c.0.s8 %v2153_v57  ;;  %v2913_v39 = vunpack.c.1.s8 %v2153_v57 }
  0x97   : > { %v1315_v19 = vpop.eup %1314  ;;  %1334 = vlog2.f32 %v500_v62  ;;  %v505_v53 = vadd.f32 %v1313_v22, %v457_v13  ;;  %3012 = vst [vmem:[#allocation47_spill] sm:$0xff] %v2150_v51  ;;  %v2920_v1 = vunpack.c.0.s8 %v2150_v51  ;;  %v2912_v31 = vunpack.c.1.s8 %v2150_v51 }
  0x98   : > { %v1317_v6 = vpop.eup %1316  ;;  %1336 = vlog2.f32 %v501_v41  ;;  %v506_v32 = vadd.f32 %v1315_v19, %v458_v63  ;;  %v2916_v40 = vunpack.c.1.s8 %v2157_v33  ;;  %v2917_v62 = vunpack.c.2.s8 %v2146_v8 }
  0x99   : > { %v1319_v7 = vpop.eup %1318  ;;  %1338 = vlog2.f32 %v502_v46  ;;  %v507_v59 = vadd.f32 %v1317_v6, %v459_v20  ;;  %v2918_v63 = vunpack.c.2.s8 %v2150_v51  ;;  %v2919_v20 = vunpack.c.2.s8 %v2153_v57 }
  0x9a   : > { %v1321_v29 = vpop.eup %1320  ;;  %1340 = vlog2.f32 %v503_v48  ;;  %v508_v4 = vadd.f32 %v1319_v7, %v460_v54  ;;  %v2921_v48 = vunpack.c.2.s8 %v2157_v33  ;;  %v2926_v6 = vunpack.c.3.s8 %v2150_v51 }
  0x9b   : > { %v1323_v14 = vpop.eup %1322  ;;  %1342 = vlog2.f32 %v504_v36  ;;  %v509_v60 = vadd.f32 %v1321_v29, %v461_v52  ;;  %v2922_v36 = vunpack.c.3.s8 %v2146_v8  ;;  %v2929_v7 = vunpack.c.3.s8 %v2153_v57 }
  0x9c   : > { %v1325_v16 = vpop.eup %1324  ;;  %1344 = vlog2.f32 %v505_v53  ;;  %v510_v5 = vadd.f32 %v1323_v14, %v462_v58  ;;  %v3016_v14 = vld [vmem:[#allocation22_spill] sm:$0xff]  ;;  %vm2229_vm2 = vcmp.eq.s32.totalorder %v2920_v1, 1  ;;  %vm2235_vm3 = vcmp.eq.s32.totalorder %v2915_v21, 1 }
  0x9d   : > { %v1327_v9 = vpop.eup %1326  ;;  %1346 = vlog2.f32 %v506_v32  ;;  %v511_v27 = vadd.f32 %v1325_v16, %v463_v11  ;;  %v3015_v11 = vld [vmem:[#allocation21_spill] sm:$0xff]  ;;  %vm2247_vm5 = vcmp.eq.s32.totalorder %v2911_v49, 1  ;;  %vm2262_vm6 = vcmp.eq.s32.totalorder %v2912_v31, 1 }
  0x9e   : > { %v1329_v35 = vpop.eup %1328  ;;  %1348 = vlog2.f32 %v507_v59  ;;  %v512_v34 = vadd.f32 %v1327_v9, %v464_v23  ;;  %vm2268_vm7 = vcmp.eq.s32.totalorder %v2913_v39, 1  ;;  %vm2274_vm8 = vcmp.eq.s32.totalorder %v2916_v40, 1  ;;  %v3049_v39 = vld [vmem:[#allocation37_spill] sm:$0xff] }
  0x9f   : > { %v1331_v44 = vpop.eup %1330  ;;  %1350 = vlog2.f32 %v508_v4  ;;  %v513_v55 = vadd.f32 %v1329_v35, %v465_v56  ;;  %vm2280_vm9 = vcmp.eq.s32.totalorder %v2917_v62, 1  ;;  %vm2295_vm10 = vcmp.eq.s32.totalorder %v2918_v63, 1 }
  0xa0   : > { %v1333_v3 = vpop.eup %1332  ;;  %1352 = vlog2.f32 %v509_v60  ;;  %v515_v41 = vmul.f32 0.6931472, %v1331_v44  ;;  %v3018_v60 = vld [vmem:[#allocation23_spill] sm:$0xff]  ;;  %vm2301_vm11 = vcmp.eq.s32.totalorder %v2919_v20, 1  ;;  %vm2307_vm12 = vcmp.eq.s32.totalorder %v2921_v48, 1  ;;  %v3060_v20 = vld [vmem:[#allocation38_spill] sm:$0xff] }
  0xa1   : > { %v1335_v13 = vpop.eup %1334  ;;  %v517_v45 = vmul.f32 0.6931472, %v1333_v3  ;;  %1354 = vlog2.f32 %v510_v5  ;;  %vm2313_vm13 = vcmp.eq.s32.totalorder %v2922_v36, 1  ;;  %v3061_v48 = vmov 0 }
  0xa2   : > { %v1337_v46 = vpop.eup %1336  ;;  %v519_v22 = vmul.f32 0.6931472, %v1335_v13  ;;  %1356 = vlog2.f32 %v511_v27  ;;  %v2177_v59 = vsub.f32 %v3015_v11, %v515_v41  ;;  %v2183_v4 = vsub.f32 %v1938_v43, %v515_v41 }
  0xa3   : > { %v1339_v19 = vpop.eup %1338  ;;  %v521_v54 = vmul.f32 0.6931472, %v1337_v46  ;;  %1358 = vlog2.f32 %v512_v34  ;;  %v2180_v23 = vsub.f32 %v3016_v14, %v517_v45  ;;  %v2189_v5 = vsub.f32 %v1943_v47, %v517_v45  ;;  %v3020_v34 = vld [vmem:[#allocation24_spill] sm:$0xff]  ;;  %v3035_v14 = vld [vmem:[#allocation25_spill] sm:$0xff] }
  0xa4   : > { %v1341_v52 = vpop.eup %1340  ;;  %v523_v53 = vmul.f32 0.6931472, %v1339_v19  ;;  %1360 = vlog2.f32 %v513_v55  ;;  %v2186_v9 = vsub.f32 %v3018_v60, %v519_v22  ;;  %v2192_v35 = vsub.f32 %v1950_v25, %v519_v22  ;;  %v3037_v60 = vld [vmem:[#allocation36_spill] sm:$0xff] }
  0xa5   : > { %v1343_v32 = vpop.eup %1342  ;;  %v525_v29 = vmul.f32 0.6931472, %v1341_v52  ;;  %3017 = vst [vmem:[#allocation21_spill] sm:$0xff] %v2180_v23  ;;  %v2195_v3 = vsub.f32 %v3020_v34, %v521_v54  ;;  %v2198_v55 = vsub.f32 %v1957_v30, %v521_v54  ;;  %v2201_v43 = vsub.f32 %v2048_v15, %v515_v41  ;;  %v3038_v34 = vld [vmem:[#allocation46_spill] sm:$0xff] }
  0xa6   : > { %v1345_v16 = vpop.eup %1344  ;;  %v527_v56 = vmul.f32 0.6931472, %v1343_v32  ;;  %3019 = vst [vmem:[#allocation22_spill] sm:$0xff] %v2186_v9  ;;  %v2204_v19 = vsub.f32 %v1843_v38, %v523_v53  ;;  %v2207_v47 = vsub.f32 %v1964_v37, %v523_v53  ;;  %v2210_v25 = vsub.f32 %v2055_v2, %v517_v45  ;;  %v3026_v32 = vld [vmem:[#allocation35_spill] sm:$0xff] }
  0xa7   : > { %v1347_v27 = vpop.eup %1346  ;;  %v529_v44 = vmul.f32 0.6931472, %v1345_v16  ;;  %3021 = vst [vmem:[#allocation23_spill] sm:$0xff] %v2195_v3  ;;  %v2219_v41 = vsub.f32 %v1861_v50, %v525_v29  ;;  %v2222_v38 = vsub.f32 %v3026_v32, %v525_v29  ;;  %v2225_v37 = vsub.f32 %v2060_v12, %v519_v22 }
  0xa8   : > { %v1349_v13 = vpop.eup %1348  ;;  %v531_v46 = vmul.f32 0.6931472, %v1347_v27  ;;  %3022 = vst [vmem:[#allocation24_spill] sm:$0xff] %v2204_v19  ;;  %v2252_v16 = vsub.f32 %v3035_v14, %v527_v56  ;;  %v2255_v27 = vsub.f32 %v3037_v60, %v527_v56  ;;  %v2291_v21 = vsub.f32 %v2070_v42, %v523_v53 }
  0xa9   : > { %v1351_v30 = vpop.eup %1350  ;;  %v533_v15 = vmul.f32 0.6931472, %v1349_v13  ;;  %3025 = vst [vmem:[#allocation50_spill] sm:$0xff] %v2219_v41  ;;  %v2258_v13 = vsub.f32 %v3038_v34, %v521_v54  ;;  %v3047_v34 = vld [vmem:[#allocation26_spill] sm:$0xff]  ;;  %v2288_v18 = vsub.f32 %v3049_v39, %v529_v44  ;;  %v3056_v42 = vmov 0 }
  0xaa   : > { %v1353_v22 = vpop.eup %1352  ;;  %v535_v11 = vmul.f32 0.6931472, %v1351_v30  ;;  %3036 = vst [vmem:[#allocation35_spill] sm:$0xff] %v2252_v16  ;;  %v2285_v31 = vsub.f32 %v3047_v34, %v529_v44  ;;  %v3057_v42 = vsel %vm2313_vm13, 4294967295, %v3056_v42  ;;  %v3058_v34 = vld [vmem:[#allocation27_spill] sm:$0xff]  ;;  %v2321_v1 = vsub.f32 %v3060_v20, %v531_v46 }
  0xab   : > { %v1355_v14 = vpop.eup %1354  ;;  %v537_v60 = vmul.f32 0.6931472, %v1353_v22  ;;  %v2318_v63 = vsub.f32 %v3058_v34, %v531_v46  ;;  %v2324_v58 = vsub.f32 %v2075_v0, %v525_v29  ;;  %v3062_v48 = vsel %vm2328_vm14, 4294967295, %v3061_v48  ;;  %v3071_v34 = vld [vmem:[#allocation28_spill] sm:$0xff] }
  0xac   : > { %3048 = vst [vmem:[#allocation25_spill] sm:$0xff] %v2285_v31  ;;  %v1357_v53 = vpop.eup %1356  ;;  %v539_v22 = vmul.f32 0.6931472, %v1355_v14  ;;  %vm2334_vm15 = vcmp.eq.s32.totalorder %v2926_v6, 1  ;;  %v3063_v36 = vmov 0  ;;  %vm2340_vm0 = vcmp.eq.s32.totalorder %v2929_v7, 1 }
  0xad   : > { %3059 = vst [vmem:[#allocation36_spill] sm:$0xff] %v2318_v63  ;;  %v3064_v36 = vsel %vm2334_vm15, 4294967295, %v3063_v36  ;;  %v3065_v20 = vmov 0  ;;  %v3067_v0 = vunpack.c.3.s8 %v2157_v33  ;;  %v3068_v29 = vmov 0  ;;  %v1359_v17 = vpop.eup %1358  ;;  %v3073_v6 = vld [vmem:[#allocation39_spill] sm:$0xff] }
  0xae   : > { %v3066_v20 = vsel %vm2340_vm0, 4294967295, %v3065_v20  ;;  %v541_v14 = vmul.f32 0.6931472, %v1357_v53  ;;  %v2351_v63 = vsub.f32 %v3071_v34, %v533_v15  ;;  %v2354_v31 = vsub.f32 %v3073_v6, %v533_v15 }
  0xaf   : > { %vm2346_vm13 = vcmp.eq.s32.totalorder %v3067_v0, 1  ;;  %v2357_v16 = vsub.f32 %v2080_v26, %v527_v56  ;;  %v3074_v7 = vunpack.c.0.s8 %v2150_v51  ;;  %v3075_v41 = vmov 0 }
  0xb0   : > { %v3069_v29 = vsel %vm2346_vm13, 4294967295, %v3068_v29  ;;  %3072 = vst [vmem:[#allocation26_spill] sm:$0xff] %v2351_v63  ;;  %v3078_v0 = vunpack.c.0.s8 %v2153_v57  ;;  %v3079_v19 = vmov 0  ;;  %v3082_v53 = vunpack.c.0.s8 %v2157_v33  ;;  %v3090_v63 = vld [vmem:[#allocation29_spill] sm:$0xff] }
  0xb1   : > { %3070 = vst [vmem:[#allocation46_spill] sm:$0xff] %v3069_v29  ;;  %vm2361_vm14 = vcmp.eq.s32.totalorder %v3074_v7, 0  ;;  %v3083_v6 = vmov 0  ;;  %v3086_v26 = vunpack.c.1.s8 %v2146_v8  ;;  %v3087_v56 = vmov 0  ;;  %v1361_v7 = vpop.eup %1360 }
  0xb2   : > { %v3076_v41 = vsel %vm2361_vm14, 4294967295, %v3075_v41  ;;  %vm2367_vm13 = vcmp.eq.s32.totalorder %v3078_v0, 0  ;;  %vm2373_vm0 = vcmp.eq.s32.totalorder %v3082_v53, 0  ;;  %v543_v34 = vmul.f32 0.6931472, %v1359_v17  ;;  %v3092_v0 = vld [vmem:[#allocation40_spill] sm:$0xff] }
  0xb3   : > { %3077 = vst [vmem:[#allocation37_spill] sm:$0xff] %v3076_v41  ;;  %v3080_v19 = vsel %vm2367_vm13, 4294967295, %v3079_v19  ;;  %v3084_v6 = vsel %vm2373_vm0, 4294967295, %v3083_v6  ;;  %vm2379_vm15 = vcmp.eq.s32.totalorder %v3086_v26, 0  ;;  %v2384_v3 = vsub.f32 %v3090_v63, %v535_v11 }
  0xb4   : > { %3081 = vst [vmem:[#allocation27_spill] sm:$0xff] %v3080_v19  ;;  %3085 = vst [vmem:[#allocation38_spill] sm:$0xff] %v3084_v6  ;;  %v3088_v56 = vsel %vm2379_vm15, 4294967295, %v3087_v56  ;;  %v2387_v9 = vsub.f32 %v3092_v0, %v535_v11  ;;  %v2390_v19 = vsub.f32 %v2085_v10, %v529_v44  ;;  %v3093_v53 = vunpack.c.1.s8 %v2150_v51 }
  0xb5   : > { %3089 = vst [vmem:[#allocation28_spill] sm:$0xff] %v3088_v56  ;;  %3091 = vst [vmem:[#allocation39_spill] sm:$0xff] %v2384_v3  ;;  %v3094_v6 = vmov 0  ;;  %v3097_v26 = vunpack.c.1.s8 %v2153_v57  ;;  %v3098_v56 = vmov 0  ;;  %v3101_v63 = vunpack.c.1.s8 %v2157_v33 }
  0xb6   : > { %vm2394_vm0 = vcmp.eq.s32.totalorder %v3093_v53, 0  ;;  %v3102_v17 = vmov 0  ;;  %v3105_v10 = vunpack.c.2.s8 %v2146_v8  ;;  %v3106_v44 = vmov 0  ;;  %v3109_v53 = vld [vmem:[#allocation30_spill] sm:$0xff] }
  0xb7   : > { %v3095_v6 = vsel %vm2394_vm0, 4294967295, %v3094_v6  ;;  %vm2400_vm15 = vcmp.eq.s32.totalorder %v3097_v26, 0  ;;  %vm2406_vm13 = vcmp.eq.s32.totalorder %v3101_v63, 0  ;;  %v545_v0 = vmul.f32 0.6931472, %v1361_v7  ;;  %v3111_v26 = vld [vmem:[#allocation41_spill] sm:$0xff] }
  0xb8   : > { %3096 = vst [vmem:[#allocation29_spill] sm:$0xff] %v3095_v6  ;;  %v3099_v56 = vsel %vm2400_vm15, 4294967295, %v3098_v56  ;;  %v3103_v17 = vsel %vm2406_vm13, 4294967295, %v3102_v17  ;;  %vm2412_vm14 = vcmp.eq.s32.totalorder %v3105_v10, 0  ;;  %v2417_v3 = vsub.f32 %v3109_v53, %v537_v60  ;;  %v3117_v10 = vld [vmem:[#allocation31_spill] sm:$0xff]  ;;  %v3121_v53 = vld [vmem:[#allocation42_spill] sm:$0xff] }
  0xb9   : > { %3100 = vst [vmem:[#allocation40_spill] sm:$0xff] %v3099_v56  ;;  %3104 = vst [vmem:[#allocation51_spill] sm:$0xff] %v3103_v17  ;;  %v3107_v44 = vsel %vm2412_vm14, 4294967295, %v3106_v44  ;;  %v2420_v6 = vsub.f32 %v3111_v26, %v537_v60  ;;  %v3112_v56 = vld [vmem:[#allocation15_spill] sm:$0xff]  ;;  %v3113_v63 = vunpack.c.2.s8 %v2150_v51  ;;  %v3114_v17 = vmov 0  ;;  %v3122_v26 = vld [vmem:[#allocation16_spill] sm:$0xff] }
  0xba   : > { %3108 = vst [vmem:[#allocation52_spill] sm:$0xff] %v3107_v44  ;;  %3110 = vst [vmem:[#allocation30_spill] sm:$0xff] %v2417_v3  ;;  %v2423_v41 = vsub.f32 %v3112_v56, %v531_v46  ;;  %v2432_v8 = vsub.f32 %v3117_v10, %v539_v22  ;;  %v3119_v44 = vld [vmem:[#allocation32_spill] sm:$0xff]  ;;  %v2438_v3 = vsub.f32 %v3121_v53, %v539_v22  ;;  %v3123_v46 = vunpack.c.2.s8 %v2153_v57  ;;  %v3129_v10 = vld [vmem:[#allocation43_spill] sm:$0xff] }
  0xbb   : > { %vm2427_vm15 = vcmp.eq.s32.totalorder %v3113_v63, 0  ;;  %v2435_v7 = vsub.f32 %v3119_v44, %v541_v14  ;;  %v2441_v33 = vsub.f32 %v3122_v26, %v533_v15  ;;  %v3124_v56 = vmov 0  ;;  %v3127_v63 = vld [vmem:[#allocation33_spill] sm:$0xff]  ;;  %v3130_v44 = vld [vmem:[#allocation44_spill] sm:$0xff]  ;;  %v3132_v15 = vld [vmem:[#allocation34_spill] sm:$0xff] }
  0xbc   : > { %v3115_v17 = vsel %vm2427_vm15, 4294967295, %v3114_v17  ;;  %3118 = vst [vmem:[#allocation15_spill] sm:$0xff] %v2432_v8  ;;  %vm2445_vm14 = vcmp.eq.s32.totalorder %v3123_v46, 0  ;;  %v2450_v51 = vsub.f32 %v3127_v63, %v543_v34  ;;  %v2453_v8 = vsub.f32 %v3129_v10, %v541_v14  ;;  %v3131_v53 = vld [vmem:[#allocation17_spill] sm:$0xff]  ;;  %v3134_v10 = vld [vmem:[#allocation18_spill] sm:$0xff]  ;;  %v3155_v40 = vld [vmem:[#allocation28_spill] sm:$0xff] }
  0xbd   : > { %3116 = vst [vmem:[#allocation41_spill] sm:$0xff] %v3115_v17  ;;  %3120 = vst [vmem:[#allocation31_spill] sm:$0xff] %v2435_v7  ;;  %v3125_v56 = vsel %vm2445_vm14, 4294967295, %v3124_v56  ;;  %v2456_v7 = vsub.f32 %v3130_v44, %v543_v34  ;;  %v2459_v17 = vsub.f32 %v3131_v53, %v535_v11  ;;  %v2462_v26 = vsub.f32 %v3132_v15, %v545_v0  ;;  %v3133_v57 = vld [vmem:[#allocation45_spill] sm:$0xff]  ;;  %v3135_v44 = vld [vmem:[#allocation19_spill] sm:$0xff] }
  0xbe   : > { %3126 = vst [vmem:[#allocation32_spill] sm:$0xff] %v3125_v56  ;;  %3128 = vst [vmem:[#allocation42_spill] sm:$0xff] %v2450_v51  ;;  %v2465_v46 = vsub.f32 %v3133_v57, %v545_v0  ;;  %v2468_v56 = vsub.f32 %v2105_v24, %v537_v60  ;;  %v2471_v63 = vsub.f32 %v2110_v28, %v539_v22  ;;  %v3142_v22 = vld [vmem:[#allocation21_spill] sm:$0xff]  ;;  %v3147_v53 = vld [vmem:[#allocation27_spill] sm:$0xff] }
  0xbf   : > { %v2474_v51 = vsub.f32 %v3134_v10, %v541_v14  ;;  %v2477_v23 = vsub.f32 %v3135_v44, %v543_v34  ;;  %v2480_v11 = vsub.f32 %v2125_v61, %v545_v0  ;;  %v646_v57 = vsel %vm2214_vm1, %v2183_v4, %v2201_v43  ;;  %v3143_v14 = vld [vmem:[#allocation37_spill] sm:$0xff]  ;;  %v3146_v0 = vld [vmem:[#allocation22_spill] sm:$0xff]  ;;  %v3150_v10 = vld [vmem:[#allocation23_spill] sm:$0xff] }
  0xc0   : > { %v647_v24 = vsel %vm2229_vm2, %v2189_v5, %v2210_v25  ;;  %v648_v28 = vsel %vm2235_vm3, %v2192_v35, %v2225_v37  ;;  %v649_v61 = vsel %vm2241_vm4, %v2198_v55, %v2258_v13  ;;  %v650_v52 = vsel %vm2247_vm5, %v2207_v47, %v2291_v21  ;;  %v3151_v44 = vld [vmem:[#allocation38_spill] sm:$0xff]  ;;  %v3154_v60 = vld [vmem:[#allocation24_spill] sm:$0xff] }
  0xc1   : > { %v651_v2 = vsel %vm2262_vm6, %v2222_v38, %v2324_v58  ;;  %v652_v45 = vsel %vm2268_vm7, %v2255_v27, %v2357_v16  ;;  %v653_v50 = vsel %vm2274_vm8, %v2288_v18, %v2390_v19  ;;  %v654_v12 = vsel %vm2280_vm9, %v2321_v1, %v2423_v41 }
  0xc2   : > { %v655_v32 = vsel %vm2295_vm10, %v2354_v31, %v2441_v33  ;;  %v656_v49 = vsel %vm2301_vm11, %v2387_v9, %v2459_v17  ;;  %v657_v30 = vsel %vm2307_vm12, %v2420_v6, %v2468_v56  ;;  %vm3136_vm1 = vnez %v3057_v42 }
  0xc3   : > { %vm3137_vm2 = vnez %v3064_v36  ;;  %vm3138_vm3 = vnez %v3066_v20  ;;  %vm3139_vm4 = vnez %v3069_v29  ;;  %vm3140_vm5 = vnez %v3062_v48 }
  0xc4   : > { %v2549_v39 = vsel %vm3140_vm5, %v2177_v59, %v646_v57  ;;  %vm3144_vm6 = vnez %v3143_v14  ;;  %vm3148_vm7 = vnez %v3147_v53  ;;  %vm3152_vm8 = vnez %v3151_v44  ;;  %v3158_v57 = vld [vmem:[#allocation49_spill] sm:$0xff]  ;;  %v3162_v14 = vld [vmem:[#allocation50_spill] sm:$0xff]  ;;  %v3165_v44 = vld [vmem:[#allocation40_spill] sm:$0xff] }
  0xc5   : > { %3141 = vst [vmem:[#allocation16_spill] sm:$0xff] %v2549_v39  ;;  %v2554_v34 = vsel %vm3144_vm6, %v3142_v22, %v647_v24  ;;  %v2559_v15 = vsel %vm3148_vm7, %v3146_v0, %v648_v28  ;;  %v2564_v62 = vsel %vm3152_vm8, %v3150_v10, %v649_v61  ;;  %vm3156_vm9 = vnez %v3155_v40  ;;  %v3178_v53 = vld [vmem:[#allocation26_spill] sm:$0xff] }
  0xc6   : > { %3145 = vst [vmem:[#allocation33_spill] sm:$0xff] %v2554_v34  ;;  %3149 = vst [vmem:[#allocation43_spill] sm:$0xff] %v2559_v15  ;;  %v2569_v48 = vsel %vm3156_vm9, %v3154_v60, %v650_v52  ;;  %v3159_v54 = vunpack.c.2.s8 %v3158_v57  ;;  %v2580_v28 = vsel %vm2394_vm0, %v3162_v14, %v651_v2  ;;  %v3164_v15 = vld [vmem:[#allocation35_spill] sm:$0xff]  ;;  %vm3166_vm11 = vnez %v3165_v44  ;;  %v3174_v34 = vld [vmem:[#allocation20_spill] sm:$0xff] }
  0xc7   : > { %3153 = vst [vmem:[#allocation44_spill] sm:$0xff] %v2564_v62  ;;  %3157 = vst [vmem:[#allocation17_spill] sm:$0xff] %v2569_v48  ;;  %v2585_v61 = vsel %vm3166_vm11, %v3164_v15, %v652_v45  ;;  %v3167_v62 = vld [vmem:[#allocation25_spill] sm:$0xff]  ;;  %v3170_v48 = vld [vmem:[#allocation36_spill] sm:$0xff]  ;;  %v3175_v39 = vunpack.c.3.s8 %v3174_v34  ;;  %v2606_v45 = vsel %vm2427_vm15, %v3178_v53, %v655_v32  ;;  %v679_v40 = vadd.f32 %v2189_v5, %v3142_v22 }
  0xc8   : > { %vm2573_vm10 = vcmp.eq.s32.totalorder %v3159_v54, 0  ;;  %v2590_v52 = vsel %vm2406_vm13, %v3167_v62, %v653_v50  ;;  %v3171_v54 = vld [vmem:[#allocation52_spill] sm:$0xff]  ;;  %v678_v50 = vadd.f32 %v2183_v4, %v2177_v59  ;;  %v681_v59 = vadd.f32 %v2198_v55, %v3150_v10 }
  0xc9   : > { %3169 = vst [vmem:[#allocation34_spill] sm:$0xff] %v2590_v52  ;;  %vm3172_vm12 = vnez %v3171_v54  ;;  %vm2599_vm5 = vcmp.eq.s32.totalorder %v3175_v39, 0  ;;  %v3180_v54 = vld [vmem:[#allocation47_spill] sm:$0xff]  ;;  %v682_v4 = vadd.f32 %v2207_v47, %v3154_v60  ;;  %v683_v5 = vadd.f32 %v2222_v38, %v3162_v14  ;;  %v3193_v14 = vld [vmem:[#allocation30_spill] sm:$0xff] }
  0xca   : > { %v2595_v29 = vsel %vm3172_vm12, %v3170_v48, %v654_v12  ;;  %v680_v12 = vadd.f32 %v2192_v35, %v3146_v0  ;;  %v3181_v34 = vunpack.c.3.s8 %v3180_v54  ;;  %v3186_v35 = vld [vmem:[#allocation48_spill] sm:$0xff]  ;;  %v684_v52 = vadd.f32 %v2255_v27, %v3164_v15  ;;  %v3194_v15 = vld [vmem:[#allocation15_spill] sm:$0xff] }
  0xcb   : > { %3173 = vst [vmem:[#allocation45_spill] sm:$0xff] %v2595_v29  ;;  %v3184_v29 = vld [vmem:[#allocation39_spill] sm:$0xff]  ;;  %v3187_v22 = vunpack.c.3.s8 %v3186_v35  ;;  %v686_v55 = vadd.f32 %v2321_v1, %v3170_v48  ;;  %v687_v47 = vadd.f32 %v2354_v31, %v3178_v53  ;;  %v3190_v38 = vunpack.c.3.s8 %v3158_v57  ;;  %v3196_v48 = vld [vmem:[#allocation42_spill] sm:$0xff] }
  0xcc   : > { %vm2616_vm0 = vcmp.eq.s32.totalorder %v3181_v34, 0  ;;  %v2623_v32 = vsel %vm2445_vm14, %v3184_v29, %v656_v49  ;;  %v685_v49 = vadd.f32 %v2288_v18, %v3167_v62  ;;  %v688_v10 = vadd.f32 %v2387_v9, %v3184_v29  ;;  %v3195_v62 = vld [vmem:[#allocation31_spill] sm:$0xff]  ;;  %v3200_v2 = vld [vmem:[#allocation16_spill] sm:$0xff] }
  0xcd   : > { %vm2633_vm13 = vcmp.eq.s32.totalorder %v3187_v22, 0  ;;  %vm2647_vm14 = vcmp.eq.s32.totalorder %v3190_v38, 0  ;;  %v689_v27 = vadd.f32 %v2420_v6, %v3193_v14  ;;  %v690_v18 = vadd.f32 %v2438_v3, %v3194_v15 }
  0xce   : > { %v691_v1 = vadd.f32 %v2453_v8, %v3195_v62  ;;  %v692_v31 = vadd.f32 %v2456_v7, %v3196_v48  ;;  %v694_v57 = vadd.f32 %v678_v50, %v2201_v43  ;;  %v695_v53 = vadd.f32 %v679_v40, %v2210_v25  ;;  %v3206_v0 = vld [vmem:[#allocation17_spill] sm:$0xff] }
  0xcf   : > { %v696_v44 = vadd.f32 %v680_v12, %v2225_v37  ;;  %v693_v9 = vadd.f32 %v2465_v46, %v2462_v26  ;;  %v697_v29 = vadd.f32 %v681_v59, %v2258_v13  ;;  %v698_v6 = vadd.f32 %v682_v4, %v2291_v21 }
  0xd0   : > { %v699_v54 = vadd.f32 %v683_v5, %v2324_v58  ;;  %v700_v34 = vadd.f32 %v684_v52, %v2357_v16  ;;  %v701_v35 = vadd.f32 %v685_v49, %v2390_v19  ;;  %v702_v22 = vadd.f32 %v686_v55, %v2423_v41 }
  0xd1   : > { %v703_v43 = vadd.f32 %v687_v47, %v2441_v33  ;;  %v704_v25 = vadd.f32 %v688_v10, %v2459_v17  ;;  %v705_v37 = vadd.f32 %v689_v27, %v2468_v56  ;;  %v706_v50 = vadd.f32 %v690_v18, %v2471_v63 }
  0xd2   : > { %v707_v13 = vadd.f32 %v691_v1, %v2474_v51  ;;  %v708_v21 = vadd.f32 %v692_v31, %v2477_v23  ;;  %v710_v40 = vmul.f32 0.05, %v694_v57  ;;  %v711_v58 = vmul.f32 0.05, %v695_v53  ;;  %v3207_v31 = vld [vmem:[#allocation34_spill] sm:$0xff] }
  0xd3   : > { %v712_v12 = vmul.f32 0.05, %v696_v44  ;;  %v709_v16 = vadd.f32 %v693_v9, %v2480_v11  ;;  %v713_v19 = vmul.f32 0.05, %v697_v29  ;;  %v714_v59 = vmul.f32 0.05, %v698_v6 }
  0xd4   : > { %v715_v41 = vmul.f32 0.05, %v699_v54  ;;  %v673_v33 = vsel %vm2573_vm10, %v3193_v14, %v657_v30  ;;  %v716_v17 = vmul.f32 0.05, %v700_v34  ;;  %v717_v56 = vmul.f32 0.05, %v701_v35 }
  0xd5   : > { %v718_v4 = vmul.f32 0.05, %v702_v22  ;;  %v3197_v5 = vsel %vm3136_vm1, %v2438_v3, %v2471_v63  ;;  %v719_v49 = vmul.f32 0.05, %v703_v43  ;;  %v720_v55 = vmul.f32 0.05, %v704_v25 }
  0xd6   : > { %v674_v52 = vsel %vm2599_vm5, %v3194_v15, %v3197_v5  ;;  %v721_v47 = vmul.f32 0.05, %v705_v37  ;;  %v3198_v30 = vsel %vm3137_vm2, %v2453_v8, %v2474_v51  ;;  %v722_v42 = vmul.f32 0.05, %v706_v50  ;;  %v3201_v8 = vld [vmem:[#allocation33_spill] sm:$0xff]  ;;  %v3204_v15 = vld [vmem:[#allocation43_spill] sm:$0xff] }
  0xd7   : > { %v675_v24 = vsel %vm2616_vm0, %v3195_v62, %v3198_v30  ;;  %v723_v38 = vmul.f32 0.05, %v707_v13  ;;  %v724_v10 = vmul.f32 0.05, %v708_v21  ;;  %v3199_v3 = vsel %vm3138_vm3, %v2456_v7, %v2477_v23  ;;  %v3205_v7 = vld [vmem:[#allocation44_spill] sm:$0xff]  ;;  %v3208_v44 = vld [vmem:[#allocation45_spill] sm:$0xff] }
  0xd8   : > { %v676_v63 = vsel %vm2633_vm13, %v3196_v48, %v3199_v3  ;;  %v725_v36 = vmul.f32 0.05, %v709_v16  ;;  %v726_v14 = vmul.f32 0.85, %v3200_v2  ;;  %v727_v51 = vmul.f32 0.85, %v3201_v8 }
  0xd9   : > { %v3203_v39 = vsel %vm3139_vm4, %v2465_v46, %v2480_v11  ;;  %v728_v23 = vmul.f32 0.85, %v3204_v15  ;;  %v729_v18 = vmul.f32 0.85, %v3205_v7  ;;  %v730_v62 = vmul.f32 0.85, %v3206_v0 }
  0xda   : > { %v677_v20 = vsel %vm2647_vm14, %v2462_v26, %v3203_v39  ;;  %v731_v1 = vmul.f32 0.85, %v2580_v28  ;;  %v732_v48 = vmul.f32 0.85, %v2585_v61  ;;  %v733_v57 = vmul.f32 0.85, %v3207_v31 }
  0xdb   : > { %v2722_v53 = vadd.f32 %v726_v14, %v710_v40  ;;  %v734_v46 = vmul.f32 0.85, %v3208_v44  ;;  %v735_v11 = vmul.f32 0.85, %v2606_v45  ;;  %v736_v26 = vmul.f32 0.85, %v2623_v32 }
  0xdc   : > { %v2727_v60 = vadd.f32 %v727_v51, %v711_v58  ;;  %v737_v9 = vmul.f32 0.85, %v673_v33  ;;  %v738_v29 = vmul.f32 0.85, %v674_v52  ;;  %v739_v6 = vmul.f32 0.85, %v675_v24 }
  0xdd   : > { %v2729_v54 = vadd.f32 %v728_v23, %v712_v12  ;;  %v740_v28 = vmul.f32 0.85, %v676_v63  ;;  %v741_v34 = vmul.f32 0.85, %v677_v20  ;;  %v2731_v61 = vadd.f32 %v729_v18, %v713_v19  ;;  %764 = sbr.rel (%p1146_p4) target bundleno = 254 (0xfe), region = 44 }
  0xde   : > { %v2733_v35 = vadd.f32 %v730_v62, %v714_v59  ;;  %v2735_v22 = vadd.f32 %v731_v1, %v715_v41  ;;  %v2737_v43 = vadd.f32 %v732_v48, %v716_v17  ;;  %v2739_v45 = vadd.f32 %v733_v57, %v717_v56 }
  0xdf   : > { %v2741_v32 = vadd.f32 %v734_v46, %v718_v4  ;;  %v2743_v25 = vadd.f32 %v735_v11, %v719_v49  ;;  %v2745_v37 = vadd.f32 %v736_v26, %v720_v55  ;;  %v2747_v50 = vadd.f32 %v737_v9, %v721_v47 }
  0xe0   : > { %v2749_v13 = vadd.f32 %v738_v29, %v722_v42  ;;  %v2751_v21 = vadd.f32 %v739_v6, %v723_v38  ;;  %v2753_v40 = vadd.f32 %v740_v28, %v724_v10  ;;  %v2755_v58 = vadd.f32 %v741_v34, %v725_v36  ;;  %v765_v34 = vld [vmem:[%s1646_s21] sm:$0xf] (!%p1146_p4) }
  0xe1   : > { %v766_v12 = vadd.f32 (!%p1146_p4), %v2733_v35, %v2722_v53  ;;  %v775_v16 = vadd.f32 (!%p1146_p4), %v2735_v22, %v2727_v60  ;;  %v784_v19 = vadd.f32 (!%p1146_p4), %v2737_v43, %v2729_v54  ;;  %v793_v59 = vadd.f32 (!%p1146_p4), %v2739_v45, %v2731_v61 }
  0xe2   : > { %v1486_v42 = vmov (!%p1146_p4), 1966171168   ;;  %v3209_v39 = vlaneseq (!%p1146_p4) }
  0xe3   : > { %v767_v41 = vadd.f32 (!%p1146_p4), %v766_v12, %v2741_v32  ;;  %v776_v33 = vadd.f32 (!%p1146_p4), %v775_v16, %v2743_v25  ;;  %v785_v17 = vadd.f32 (!%p1146_p4), %v784_v19, %v2745_v37  ;;  %v794_v56 = vadd.f32 (!%p1146_p4), %v793_v59, %v2747_v50  ;;  %v3210_v19 = vld [vmem:[#allocation14_spill] sm:$0xff] (!%p1146_p4) }
  0xe4   : > { %v809_v38 = vunpack.c.l.s4 %v1486_v42  ;;  %v812_v20 = vshrl.u32 %v3209_v39, 7  ;;  %vm3211_vm15 = vnez %v3210_v19 }
  0xe5   : > { %v768_v4 = vadd.f32 %v767_v41, %v2749_v13  ;;  %v777_v5 = vadd.f32 %v776_v33, %v2751_v21  ;;  %v786_v52 = vadd.f32 %v785_v17, %v2753_v40  ;;  %v795_v49 = vadd.f32 %v794_v56, %v2755_v58 }
  0xe6   : > { %v810_v27 = vunpack.c.0.s8 %v809_v38 }
  0xe7   : > { %v769_v55 = vrot.slane %v768_v4, 4  ;;  %v778_v47 = vrot.slane %v777_v5, 4  ;;  %v787_v30 = vrot.slane %v786_v52, 4  ;;  %v796_v24 = vrot.slane %v795_v49, 4 }
  0xe8   : > { %v813_v31 = vsub.s32 %v810_v27, %v812_v20 }
  0xe9   : > { %v770_v10 = vadd.f32 %v769_v55, %v768_v4  ;;  %v779_v3 = vadd.f32 %v778_v47, %v777_v5  ;;  %v788_v63 = vadd.f32 %v787_v30, %v786_v52  ;;  %v797_v36 = vadd.f32 %v796_v24, %v795_v49 }
  0xeb   : > { %v771_v2 = vrot.slane %v770_v10, 2  ;;  %v780_v14 = vrot.slane %v779_v3, 2  ;;  %v789_v8 = vrot.slane %v788_v63, 2  ;;  %v798_v51 = vrot.slane %v797_v36, 2 }
  0xed   : > { %v772_v15 = vadd.f32 %v771_v2, %v770_v10  ;;  %v781_v23 = vadd.f32 %v780_v14, %v779_v3  ;;  %v790_v7 = vadd.f32 %v789_v8, %v788_v63  ;;  %v799_v18 = vadd.f32 %v798_v51, %v797_v36 }
  0xef   : > { %v773_v0 = vrot.slane %v772_v15, 1  ;;  %v782_v62 = vrot.slane %v781_v23, 1  ;;  %v791_v1 = vrot.slane %v790_v7, 1  ;;  %v800_v48 = vrot.slane %v799_v18, 1 }
  0xf1   : > { %v774_v57 = vadd.f32 %v773_v0, %v772_v15  ;;  %v783_v44 = vadd.f32 %v782_v62, %v781_v23  ;;  %v792_v46 = vadd.f32 %v791_v1, %v790_v7  ;;  %v801_v11 = vadd.f32 %v800_v48, %v799_v18 }
  0xf3   : > { %v806_v26 = vcombine.low %v774_v57, %v783_v44  ;;  %v807_v9 = vcombine.low %v792_v46, %v801_v11 }
  0xf5   : > { %v814_v29 = vrot.slane %v806_v26, %v813_v31  ;;  %v821_v6 = vrot.slane %v807_v9, %v813_v31 }
  0xf7   : > { %v822_v28 = vcombine.low %v814_v29, %v821_v6 }
  0xf9   : > { %v829_v12 = vrot.slane %v822_v28, %v813_v31 }
  0xfb   : > { %v831_v16 = vadd.f32 %v829_v12, %v765_v34 }
  0xfd   : > { %836 = vst.msk [vmem:[%s1646_s21] sm:$0xf] %vm3211_vm15, %v831_v16 }
  0xfe PF: > { %p1147_p9 = scmp.le.s32.totalorder %s1654_s18, 256 }
  0xff   : > { %v3212_v59 = vlaneseq (!%p1147_p9)  ;;  %v855_v5 = vstv (!%p1147_p9), %s1145_s7 }
 0x100   : > { %840 = sbr.rel (%p1147_p9) target bundleno = 305 (0x131), region = 48 }
 0x101   : > { %v2781_v41 = vshrl.u32 (!%p1147_p9), %v3212_v59, 7  ;;  %v847_v33 = vand.u32 (!%p1147_p9), 127, %v3212_v59 }
 0x103   : > { %v843_v17 = vadd.s32 (!%p1147_p9), 8, %v2781_v41  ;;  %v844_v56 = vadd.s32 (!%p1147_p9), 16, %v2781_v41  ;;  %v845_v4 = vadd.s32 (!%p1147_p9), 24, %v2781_v41  ;;  %v851_v52 = vmul.u32 (!%p1147_p9), 512, %v2781_v41 }
 0x104   : > { %v848_v49 = vadd.s32 (!%p1147_p9), 128, %v847_v33  ;;  %v849_v55 = vadd.s32 (!%p1147_p9), 256, %v847_v33  ;;  %v850_v24 = vadd.s32 (!%p1147_p9), 384, %v847_v33 }
 0x105   : > { %v852_v47 = vmul.u32 (!%p1147_p9), 512, %v843_v17  ;;  %v853_v30 = vmul.u32 (!%p1147_p9), 512, %v844_v56  ;;  %v856_v38 = vadd.s32 (!%p1147_p9), %v855_v5, %v851_v52 }
 0x106   : > { %v854_v42 = vmul.u32 (!%p1147_p9), 512, %v845_v4 }
 0x107   : > { %v857_v10 = vadd.s32 %v855_v5, %v852_v47  ;;  %v858_v3 = vadd.s32 %v855_v5, %v853_v30  ;;  %v860_v36 = vadd.s32 %v856_v38, %v847_v33  ;;  %v861_v2 = vadd.s32 %v856_v38, %v848_v49 }
 0x108   : > { %v859_v63 = vadd.s32 %v855_v5, %v854_v42  ;;  %v862_v14 = vadd.s32 %v856_v38, %v849_v55  ;;  %v863_v8 = vadd.s32 %v856_v38, %v850_v24 }
 0x109   : > { %v864_v51 = vadd.s32 %v857_v10, %v847_v33  ;;  %v865_v27 = vadd.s32 %v857_v10, %v848_v49  ;;  %v866_v39 = vadd.s32 %v857_v10, %v849_v55  ;;  %v867_v20 = vadd.s32 %v857_v10, %v850_v24 }
 0x10a   : > { %v868_v15 = vadd.s32 %v858_v3, %v847_v33  ;;  %v869_v23 = vadd.s32 %v858_v3, %v848_v49  ;;  %v870_v7 = vadd.s32 %v858_v3, %v849_v55  ;;  %v871_v18 = vadd.s32 %v858_v3, %v850_v24 }
 0x10b   : > { %v872_v0 = vadd.s32 %v859_v63, %v847_v33  ;;  %v873_v62 = vadd.s32 %v859_v63, %v848_v49  ;;  %v874_v1 = vadd.s32 %v859_v63, %v849_v55  ;;  %v875_v48 = vadd.s32 %v859_v63, %v850_v24 }
 0x10c   : > { %vm876_vm1 = vcmp.lt.s32.totalorder %v860_v36, 256  ;;  %vm877_vm2 = vcmp.lt.s32.totalorder %v861_v2, 256  ;;  %vm878_vm3 = vcmp.lt.s32.totalorder %v862_v14, 256  ;;  %vm879_vm4 = vcmp.lt.s32.totalorder %v863_v8, 256 }
 0x10d   : > { %vm880_vm6 = vcmp.lt.s32.totalorder %v864_v51, 256  ;;  %vm881_vm7 = vcmp.lt.s32.totalorder %v865_v27, 256  ;;  %vm882_vm8 = vcmp.lt.s32.totalorder %v866_v39, 256  ;;  %vm883_vm9 = vcmp.lt.s32.totalorder %v867_v20, 256 }
 0x10e   : > { %vm884_vm10 = vcmp.lt.s32.totalorder %v868_v15, 256  ;;  %vm885_vm11 = vcmp.lt.s32.totalorder %v869_v23, 256  ;;  %vm886_vm12 = vcmp.lt.s32.totalorder %v870_v7, 256  ;;  %vm887_vm5 = vcmp.lt.s32.totalorder %v871_v18, 256 }
 0x10f   : > { %vm888_vm0 = vcmp.lt.s32.totalorder %v872_v0, 256  ;;  %v892_v31 = vsel %vm876_vm1, %v2722_v53, 0.0  ;;  %v893_v57 = vsel %vm877_vm2, %v2727_v60, 0.0  ;;  %v894_v44 = vsel %vm878_vm3, %v2729_v54, 0.0 }
 0x110   : > { %v896_v46 = vsel %vm880_vm6, %v2733_v35, 0.0  ;;  %v897_v11 = vsel %vm881_vm7, %v2735_v22, 0.0  ;;  %v898_v26 = vsel %vm882_vm8, %v2737_v43, 0.0  ;;  %vm889_vm13 = vcmp.lt.s32.totalorder %v873_v62, 256 }
 0x111   : > { %vm890_vm14 = vcmp.lt.s32.totalorder %v874_v1, 256  ;;  %v895_v9 = vsel %vm879_vm4, %v2731_v61, 0.0  ;;  %v899_v29 = vsel %vm883_vm9, %v2739_v45, 0.0  ;;  %vm891_vm15 = vcmp.lt.s32.totalorder %v875_v48, 256  ;;  %v908_v1 = vld [vmem:[%s1646_s21] sm:$0xf] }
 0x112   : > { %v900_v53 = vsel %vm884_vm10, %v2741_v32, 0.0  ;;  %v901_v60 = vsel %vm885_vm11, %v2743_v25, 0.0  ;;  %v902_v54 = vsel %vm886_vm12, %v2745_v37, 0.0  ;;  %v903_v35 = vsel %vm887_vm5, %v2747_v50, 0.0 }
 0x113   : > { %v909_v22 = vadd.f32 %v896_v46, %v892_v31  ;;  %v918_v43 = vadd.f32 %v897_v11, %v893_v57  ;;  %v927_v6 = vadd.f32 %v898_v26, %v894_v44  ;;  %v904_v61 = vsel %vm888_vm0, %v2749_v13, 0.0  ;;  %v3213_v57 = vld [vmem:[#allocation14_spill] sm:$0xff] }
 0x114   : > { %v905_v45 = vsel %vm889_vm13, %v2751_v21, 0.0  ;;  %v906_v28 = vsel %vm890_vm14, %v2753_v40, 0.0  ;;  %v936_v32 = vadd.f32 %v899_v29, %v895_v9  ;;  %v907_v34 = vsel %vm891_vm15, %v2755_v58, 0.0 }
 0x115   : > { %v910_v25 = vadd.f32 %v909_v22, %v900_v53  ;;  %v919_v12 = vadd.f32 %v918_v43, %v901_v60  ;;  %v928_v16 = vadd.f32 %v927_v6, %v902_v54  ;;  %v1487_v49 = vmov 1966171168  }
 0x116   : > { %v937_v37 = vadd.f32 %v936_v32, %v903_v35  ;;  %v952_v40 = vunpack.c.l.s4 %v1487_v49  ;;  %vm3214_vm1 = vnez %v3213_v57 }
 0x117   : > { %v911_v19 = vadd.f32 %v910_v25, %v904_v61  ;;  %v920_v59 = vadd.f32 %v919_v12, %v905_v45  ;;  %v929_v50 = vadd.f32 %v928_v16, %v906_v28 }
 0x118   : > { %v938_v33 = vadd.f32 %v937_v37, %v907_v34  ;;  %v953_v3 = vunpack.c.0.s8 %v952_v40 }
 0x119   : > { %v912_v17 = vrot.slane %v911_v19, 4  ;;  %v921_v56 = vrot.slane %v920_v59, 4  ;;  %v930_v4 = vrot.slane %v929_v50, 4 }
 0x11a   : > { %v939_v5 = vrot.slane %v938_v33, 4  ;;  %v956_v20 = vsub.s32 %v953_v3, %v2781_v41 }
 0x11b   : > { %v913_v13 = vadd.f32 %v912_v17, %v911_v19  ;;  %v922_v52 = vadd.f32 %v921_v56, %v920_v59  ;;  %v931_v21 = vadd.f32 %v930_v4, %v929_v50 }
 0x11c   : > { %v940_v55 = vadd.f32 %v939_v5, %v938_v33 }
 0x11d   : > { %v914_v47 = vrot.slane %v913_v13, 2  ;;  %v923_v58 = vrot.slane %v922_v52, 2  ;;  %v932_v30 = vrot.slane %v931_v21, 2 }
 0x11e   : > { %v941_v24 = vrot.slane %v940_v55, 2 }
 0x11f   : > { %v915_v42 = vadd.f32 %v914_v47, %v913_v13  ;;  %v924_v38 = vadd.f32 %v923_v58, %v922_v52  ;;  %v933_v10 = vadd.f32 %v932_v30, %v931_v21 }
 0x120   : > { %v942_v63 = vadd.f32 %v941_v24, %v940_v55 }
 0x121   : > { %v916_v36 = vrot.slane %v915_v42, 1  ;;  %v925_v2 = vrot.slane %v924_v38, 1  ;;  %v934_v14 = vrot.slane %v933_v10, 1 }
 0x122   : > { %v943_v8 = vrot.slane %v942_v63, 1 }
 0x123   : > { %v917_v51 = vadd.f32 %v916_v36, %v915_v42  ;;  %v926_v27 = vadd.f32 %v925_v2, %v924_v38  ;;  %v935_v39 = vadd.f32 %v934_v14, %v933_v10 }
 0x124   : > { %v944_v15 = vadd.f32 %v943_v8, %v942_v63 }
 0x125   : > { %v949_v23 = vcombine.low %v917_v51, %v926_v27 }
 0x126   : > { %v950_v7 = vcombine.low %v935_v39, %v944_v15 }
 0x127   : > { %v957_v18 = vrot.slane %v949_v23, %v956_v20 }
 0x128   : > { %v964_v0 = vrot.slane %v950_v7, %v956_v20 }
 0x12a   : > { %v965_v62 = vcombine.low %v957_v18, %v964_v0 }
 0x12c   : > { %v972_v48 = vrot.slane %v965_v62, %v956_v20 }
 0x12e   : > { %v974_v31 = vadd.f32 %v972_v48, %v908_v1 }
 0x130   : > { %979 = vst.msk [vmem:[%s1646_s21] sm:$0xf] %vm3214_vm1, %v974_v31 }
 0x131 PF: > { %s1156_s20 = sshll.u32 %s1468_s12, 6  ;;  %s995_s28 = sshll.u32 %s1646_s21, 4  ;;  %s996_s28 = int_to_ptr.vmem [resolvable:$true] %s995_s28 }
 0x132   : > { %s2821_s25 = scalar_lea.hbm %s2867_s2, %s1156_s20  ;;  %s981_s29 = scalar_lea.sflag [#allocation4], %s1622_s3 }
 0x133   : > { %s1390_s30 = scalar_lea.vmem %s996_s28, 64  ;;  %p3215_p5 = scmp.ne.s32.totalorder %s2962_s22, 0 }
 0x134   : > { %p1391_p11 = scmp.ne.s32.totalorder %s996_s28, %s1390_s30  ;;  %s1488_s6 = smov [#allocation7]  }
 0x135   : > { %s1394_s5 = sshll.u32 %s1488_s6, 4  ;;  %s1395_s5 = int_to_ptr.vmem [resolvable:$false] %s1394_s5 }
 0x136   : > { %p1392_p6 = pnand %p1391_p11, %p3215_p5  ;;  %s1396_s4 = scalar_lea.vmem %s1395_s5, 128 }
 0x137   : > { %p1397_p10 = scmp.lt.s32.totalorder %s996_s28, %s1395_s5  ;;  %p1398_p13 = scmp.lt.s32.totalorder %s1396_s4, %s1390_s30 }
 0x138   : > { %p1393_p7 = pneg %p1392_p6 }
 0x139   : > { %p1399_p0 = por %p1398_p13, %p1397_p10 }
 0x13b   : > { %p1400_p2 = pnand %p1399_p0, %p1393_p7 }
 0x13d   : > { %1403 = shalt.err (!%p1400_p2)
}
 0x13e   : > { %s1404_s12 = scalar_lea.hbm %s2821_s25, 64  ;;  %s1408_s8 = scalar_lea.hbm %s2867_s2, 128 }
 0x13f   : > { %p1405_p1 = scmp.ne.s32.totalorder %s2821_s25, %s1404_s12  ;;  %p1409_p8 = scmp.lt.u32.totalorder %s2821_s25, %s2867_s2 }
 0x140   : > { %p1410_p4 = scmp.lt.u32.totalorder %s1408_s8, %s1404_s12  ;;  %p1412_p11 = scmp.lt.u32.totalorder %s1404_s12, %s2821_s25 }
 0x141   : > { %p1406_p3 = pnand %p1405_p1, %p3215_p5 }
 0x142   : > { %p1411_p9 = por %p1410_p4, %p1409_p8 }
 0x143   : > { %p1407_p12 = pneg %p1406_p3 }
 0x144   : > { %p1413_p6 = por %p1412_p11, %p1411_p9 }
 0x146   : > { %p1414_p7 = pnand %p1413_p6, %p1407_p12 }
 0x148   : > { %1417 = shalt.err (!%p1414_p7)
}
 0x149   : > { %1170 = dma.vmem_to_hbm [thread:$0]  (%p3215_p5), %s996_s28, 64, %s2821_s25, %s981_s29  }
 0x14a PF: > { %s1007_s21 = sand.u32 1, %s1456_s9   ;;  %p3216_p10 = scmp.ne.s32.totalorder %s2963_s24, 0 }
 0x14b   : > { %p3217_p13 = scmp.ge.s32.totalorder %s1476_s14, 2  ;;  %s1008_s7 = scalar_lea.sflag [#allocation4], %s1007_s21 }
 0x14d   : > { %p1173_p0 = pnand %p3217_p13, %p3216_p10 }
 0x14f   : > { %1451 = dma.done.wait (!%p1173_p0), %s1008_s7, 64  }
 0x150   : > { %1453 = vsyncadd (!%p1173_p0), %s1008_s7, 4294967232  ;;  %s21_s14 = sadd.s32 1, %s1476_s14   ;;  %s3218_s9 = smov %s1460_s10 }
 0x151   : > { %p18_p2 = scmp.ge.s32.totalorder %s21_s14, 4   ;;  %s3219_s10 = smov %s1464_s11 }
 0x152   : > { %s3220_s11 = smov %s1560_s23  ;;  %s3221_s12 = smov %s1472_s13 }
 0x153   : > { %s3222_s13 = smov %s3224_s17  ;;  %20 = sbr.rel (!%p18_p2) target bundleno = 8 (0x8), region = 105 }
 0x15a   :  { %1013 = vsyncpa [#allocation3], 1 }
 0x15b   :  { %1015 = vsyncpa [#allocation3 + $0x1], 1 }
 0x15c   :  { %1016 = vsyncpa [#allocation6], 1 }
 0x15d   :  { %1018 = vsyncpa [#allocation6 + $0x1], 1 }
 0x15e   :  { %1019 = vsyncpa [#allocation4], 1 }
 0x15f   :  { %1021 = vsyncpa [#allocation4 + $0x1], 1 }

</bundles_post_ra>
